<compile_context>
chip_gen: v5e
topology: v5e:2x2
jax: 0.10.0
libtpu: 0.0.40
codegen_flags: <defaults>
</compile_context>

<pallas_src>
import functools

import jax
import jax.numpy as jnp
from jax import lax
from jax.experimental import pallas as pl
from jax.experimental.pallas import tpu as pltpu

_LANE = 128
_SUBLANE = 8

_TM_MAX = 512
_TN_MAX = 256
_TK_MAX = 1024
_VMEM_LIMIT_BYTES = 48 * 1024 * 1024
# Whole-forward-in-VMEM threshold for the fused path (conservative so the
# same config also fits v7x's 64 MiB physical VMEM with compiler scratch).
_FUSED_BUDGET_BYTES = 12 * 1024 * 1024


def _round_up(x, m):
    return (x + m - 1) // m * m


def _softplus(x):
    # Matches torch.nn.Softplus(beta=1, threshold=20).
    return jnp.where(x > 20.0, x, jnp.log1p(jnp.exp(jnp.minimum(x, 20.0))))


# ===========================================================================
# PRIMARY: fully fused single-kernel forward (all operands resident in VMEM)
# ===========================================================================
def _fused_mlp_kernel(*refs):
    """refs = (z_ref, w0, b0, w1, b1, ..., w6, b6, o_ref); full-array blocks.

    Runs the whole padded affine chain:
      h = z; for each layer: h = h @ W + b; softplus on all but the last.
    """
    z_ref = refs[0]
    o_ref = refs[-1]
    wb = refs[1:-1]
    n_layers = len(wb) // 2

    h = z_ref[...]
    for l in range(n_layers):
        w = wb[2 * l][...]
        b = wb[2 * l + 1][...]
        h = jnp.dot(h, w, preferred_element_type=jnp.float32) + b
        if l < n_layers - 1:
            h = _softplus(h)
    o_ref[...] = h


def _conv_as_dense(w, H, W, *, stride=2, pad=2):
    """Exact dense (NCHW-flat in -> NCHW-flat out) matrix of a Conv2d.

    w: (OC, IC, KH, KW) PyTorch layout.  Built once at prep time by pushing
    the identity basis through lax.conv (entries are exactly the conv taps).
    """
    OC, IC, KH, KW = w.shape
    basis = jnp.eye(IC * H * W, dtype=w.dtype).reshape(IC * H * W, IC, H, W)
    out = lax.conv_general_dilated(
        basis, w, window_strides=(stride, stride),
        padding=((pad, pad), (pad, pad)),
        dimension_numbers=("NCHW", "OIHW", "NCHW"))
    OH, OW = out.shape[2], out.shape[3]
    return out.reshape(IC * H * W, OC * OH * OW), OH, OW


def prepare_fused_score(params, *, image_size):
    """One-time weight folding for the fused path.

    Returns (padded_layers, out_dim) or None if it would not fit VMEM.
    Padding is exact: padded input features of every layer are either 0 or
    softplus(0), and they always hit zero-padded weight rows.
    """
    z_dim = params["zfc_w"].shape[0]
    dims = [z_dim, image_size ** 2]
    h = image_size
    for i in range(4):
        h //= 2
        dims.append(params[f"conv{i}_w"].shape[0] * h * h)
    dims += [params["flat_w"].shape[1], params["score_w"].shape[1]]

    total_bytes = 0
    for din, dout in zip(dims[:-1], dims[1:]):
        total_bytes += (_round_up(din, _LANE) * _round_up(dout, _LANE)
                        + _round_up(dout, _LANE)) * 4
    if total_bytes > _FUSED_BUDGET_BYTES:
        return None

    layers = [(params["zfc_w"], params["zfc_b"])]
    Hc = Wc = image_size
    for i in range(4):
        wd, OH, OW = _conv_as_dense(params[f"conv{i}_w"], Hc, Wc)
        bd = jnp.repeat(params[f"conv{i}_b"], OH * OW)   # NCHW-flat bias
        layers.append((wd, bd))
        Hc, Wc = OH, OW
    layers.append((params["flat_w"], params["flat_b"]))
    layers.append((params["score_w"], params["score_b"]))

    padded = []
    for w, b in layers:
        kin, kout = w.shape
        kin_p, kout_p = _round_up(kin, _LANE), _round_up(kout, _LANE)
        wp = jnp.pad(w, ((0, kin_p - kin), (0, kout_p - kout)))
        bp = jnp.pad(b, (0, kout_p - kout)).reshape(1, kout_p)
        padded.append((wp, bp))
    return tuple(padded), int(dims[-1])


def score_forward_fused(layers, z, *, out_dim):
    """Single pallas_call for the whole forward; one slice at the very end."""
    B = z.shape[0]
    Bp = _round_up(B, _SUBLANE)
    zin_p = layers[0][0].shape[0]
    zp = jnp.pad(z, ((0, Bp - B), (0, zin_p - z.shape[1])))

    args = [zp]
    for wp, bp in layers:
        args += [wp, bp]
    out_p = layers[-1][0].shape[1]

    flops = sum(2 * Bp * w.shape[0] * w.shape[1] for w, _ in layers)
    trans = sum(2 * Bp * w.shape[1] for w, _ in layers[:-1])
    bytes_acc = 4 * (zp.size + Bp * out_p
                     + sum(w.size + b.size for w, b in layers))

    out = pl.pallas_call(
        _fused_mlp_kernel,
        out_shape=jax.ShapeDtypeStruct((Bp, out_p), jnp.float32),
        compiler_params=pltpu.CompilerParams(
            vmem_limit_bytes=_VMEM_LIMIT_BYTES),
        cost_estimate=pl.CostEstimate(
            flops=flops, transcendentals=trans, bytes_accessed=bytes_acc),
    )(*args)
    return out[:B, :out_dim]


# ===========================================================================
# FALLBACK: general tiled GEMM path (configs too large for the fused path)
# ===========================================================================
def _pick_tile(dim_p, granule, max_tile):
    """Largest multiple-of-`granule` divisor of dim_p that is <= max_tile."""
    if dim_p <= max_tile:
        return dim_p
    n_gran = dim_p // granule
    nb = -(-dim_p // max_tile)          # ceil(dim_p / max_tile)
    while n_gran % nb:
        nb += 1
    return (n_gran // nb) * granule


def _linear_kernel(x_ref, w_ref, b_ref, o_ref, acc_ref, *, apply_softplus):
    k = pl.program_id(2)

    @pl.when(k == 0)
    def _():
        acc_ref[...] = jnp.zeros_like(acc_ref)

    acc_ref[...] += jnp.dot(x_ref[...], w_ref[...],
                            preferred_element_type=jnp.float32)

    @pl.when(k == pl.num_programs(2) - 1)
    def _():
        acc = acc_ref[...] + b_ref[...]
        if apply_softplus:
            acc = _softplus(acc)
        o_ref[...] = acc                 # output is f32: no astype copy


def linear_pallas(x, w, b, *, apply_softplus):
    """x: (M, K), w: (K, N), b: (N,) -> (M, N) f32, tiled & pipelined."""
    M, K = x.shape
    N = w.shape[1]
    Mp, Kp, Np = _round_up(M, _SUBLANE), _round_up(K, _LANE), _round_up(N, _LANE)

    tm = _pick_tile(Mp, _SUBLANE, _TM_MAX)
    tk = _pick_tile(Kp, _LANE, _TK_MAX)
    tn = _pick_tile(Np, _LANE, _TN_MAX)
    # v7x megacore: expose >=2 "parallel" blocks when the problem allows it.
    if (Mp // tm) * (Np // tn) == 1:
        if Np >= 2 * _LANE and (Np // 2) % _LANE == 0:
            tn = Np // 2
        elif Mp >= 2 * _SUBLANE and (Mp // 2) % _SUBLANE == 0:
            tm = Mp // 2

    xp = x if (Mp == M and Kp == K) else jnp.pad(x, ((0, Mp - M), (0, Kp - K)))
    wp = w if (Kp == K and Np == N) else jnp.pad(w, ((0, Kp - K), (0, Np - N)))
    bp = (b if Np == N else jnp.pad(b, (0, Np - N))).reshape(1, Np)

    grid = (Mp // tm, Np // tn, Kp // tk)
    cost = pl.CostEstimate(
        flops=2 * Mp * Np * Kp,
        transcendentals=(2 * Mp * Np) if apply_softplus else 0,
        # account for tiling re-reads: A read Np/tn times, B read Mp/tm times.
        bytes_accessed=4 * (Mp * Kp * (Np // tn) + Kp * Np * (Mp // tm)
                            + Mp * Np + Np * (Mp // tm) * (Np // tn)),
    )

    out = pl.pallas_call(
        functools.partial(_linear_kernel, apply_softplus=apply_softplus),
        out_shape=jax.ShapeDtypeStruct((Mp, Np), jnp.float32),
        grid_spec=pltpu.PrefetchScalarGridSpec(
            num_scalar_prefetch=0,
            grid=grid,
            in_specs=[
                pl.BlockSpec((tm, tk), lambda i, j, k: (i, k)),
                pl.BlockSpec((tk, tn), lambda i, j, k: (k, j)),
                pl.BlockSpec((1, tn), lambda i, j, k: (0, j)),
            ],
            out_specs=pl.BlockSpec((tm, tn), lambda i, j, k: (i, j)),
            scratch_shapes=[pltpu.VMEM((tm, tn), jnp.float32)],
        ),
        compiler_params=pltpu.CompilerParams(
            dimension_semantics=("parallel", "parallel", "arbitrary"),
            vmem_limit_bytes=_VMEM_LIMIT_BYTES,
        ),
        cost_estimate=cost,
    )(xp, wp, bp)

    if Mp == M and Np == N:
        return out
    return out[:M, :N]


def _mlp_tail_kernel(h_ref, w1_ref, b1_ref, w2_ref, b2_ref, o_ref, acc_ref):
    k = pl.program_id(0)

    @pl.when(k == 0)
    def _():
        acc_ref[...] = jnp.zeros_like(acc_ref)

    acc_ref[...] += jnp.dot(h_ref[...], w1_ref[...],
                            preferred_element_type=jnp.float32)

    @pl.when(k == pl.num_programs(0) - 1)
    def _():
        hidden = _softplus(acc_ref[...] + b1_ref[...])
        out = jnp.dot(hidden, w2_ref[...], preferred_element_type=jnp.float32)
        o_ref[...] = out + b2_ref[...]


def mlp_tail_pallas(h, w1, b1, w2, b2):
    """softplus(h @ w1 + b1) @ w2 + b2 in one pallas_call (hidden in VMEM)."""
    M, K1 = h.shape
    H1 = w1.shape[1]                    # 512, lane-aligned
    N2 = w2.shape[1]

    Mp = _round_up(M, _SUBLANE)
    K1p = _round_up(K1, _LANE)
    tk = _pick_tile(K1p, _LANE, _TK_MAX)
    N2p = _round_up(N2, _LANE)

    hp = h if (Mp == M and K1p == K1) else jnp.pad(h, ((0, Mp - M), (0, K1p - K1)))
    w1p = w1 if K1p == K1 else jnp.pad(w1, ((0, K1p - K1), (0, 0)))
    b1p = b1.reshape(1, H1)
    w2p = w2 if N2p == N2 else jnp.pad(w2, ((0, 0), (0, N2p - N2)))
    b2p = (b2 if N2p == N2 else jnp.pad(b2, (0, N2p - N2))).reshape(1, N2p)

    grid = (K1p // tk,)
    cost = pl.CostEstimate(
        flops=2 * Mp * H1 * K1p + 2 * Mp * H1 * N2p,
        transcendentals=2 * Mp * H1,
        bytes_accessed=4 * (Mp * K1p + K1p * H1 + H1 * N2p + Mp * N2p + H1 + N2p),
    )

    out = pl.pallas_call(
        _mlp_tail_kernel,
        out_shape=jax.ShapeDtypeStruct((Mp, N2p), jnp.float32),
        grid_spec=pltpu.PrefetchScalarGridSpec(
            num_scalar_prefetch=0,
            grid=grid,
            in_specs=[
                pl.BlockSpec((Mp, tk), lambda k: (0, k)),
                pl.BlockSpec((tk, H1), lambda k: (k, 0)),
                pl.BlockSpec((1, H1), lambda k: (0, 0)),
                pl.BlockSpec((H1, N2p), lambda k: (0, 0)),
                pl.BlockSpec((1, N2p), lambda k: (0, 0)),
            ],
            out_specs=pl.BlockSpec((Mp, N2p), lambda k: (0, 0)),
            scratch_shapes=[pltpu.VMEM((Mp, H1), jnp.float32)],
        ),
        compiler_params=pltpu.CompilerParams(
            dimension_semantics=("arbitrary",),
            vmem_limit_bytes=_VMEM_LIMIT_BYTES,
        ),
        cost_estimate=cost,
    )(hp, w1p, b1p, w2p, b2p)

    return out[:M, :N2]


def _im2col_nhwc(x, k, stride, pad):
    """x: (B, H, W, C) -> patches (B*OH*OW, k*k*C) in (KH, KW, IC) order."""
    B, H, W, C = x.shape
    xp = jnp.pad(x, ((0, 0), (pad, pad), (pad, pad), (0, 0)))
    OH = (H + 2 * pad - k) // stride + 1
    OW = (W + 2 * pad - k) // stride + 1
    cols = []
    for kh in range(k):
        for kw in range(k):
            cols.append(
                xp[:, kh:kh + stride * OH:stride, kw:kw + stride * OW:stride, :])
    patches = jnp.concatenate(cols, axis=-1)
    return patches.reshape(B * OH * OW, k * k * C), OH, OW


def conv2d_softplus(x_nhwc, w, b):
    """Conv2d(k=5, s=2, p=2) + Softplus via NHWC im2col + tiled Pallas GEMM."""
    B = x_nhwc.shape[0]
    OC, IC, KH, KW = w.shape
    patches, OH, OW = _im2col_nhwc(x_nhwc, KH, 2, 2)
    w_flat = jnp.transpose(w, (2, 3, 1, 0)).reshape(KH * KW * IC, OC)
    out = linear_pallas(patches, w_flat, b, apply_softplus=True)
    return out.reshape(B, OH, OW, OC)


def score_forward_tiled(params, z, *, image_size):
    """General multi-kernel path (used when the fused path exceeds VMEM)."""
    B = z.shape[0]
    h = linear_pallas(z, params["zfc_w"], params["zfc_b"], apply_softplus=True)
    h = h.reshape(B, image_size, image_size, 1)
    for i in range(4):
        h = conv2d_softplus(h, params[f"conv{i}_w"], params[f"conv{i}_b"])
    # Single NHWC->NCHW conversion so flatten matches PyTorch's .view(B, -1).
    h = jnp.transpose(h, (0, 3, 1, 2)).reshape(B, -1)
    return mlp_tail_pallas(h, params["flat_w"], params["flat_b"],
                           params["score_w"], params["score_b"])


# ===========================================================================
# Parameter init (deterministic, PyTorch-default-like uniform(+-1/sqrt(fan)))
# ===========================================================================
def _init_linear(key, fan_in, fan_out):
    kw, kb = jax.random.split(key)
    bound = 1.0 / jnp.sqrt(jnp.float32(fan_in))
    w = jax.random.uniform(kw, (fan_in, fan_out), jnp.float32, -bound, bound)
    b = jax.random.uniform(kb, (fan_out,), jnp.float32, -bound, bound)
    return w, b


def _init_conv(key, oc, ic, k):
    kw, kb = jax.random.split(key)
    fan_in = ic * k * k
    bound = 1.0 / jnp.sqrt(jnp.float32(fan_in))
    w = jax.random.uniform(kw, (oc, ic, k, k), jnp.float32, -bound, bound)
    b = jax.random.uniform(kb, (oc,), jnp.float32, -bound, bound)
    return w, b


def init_score_params(key, *, nef, z_dim, image_size):
    keys = jax.random.split(key, 7)
    params = {}
    params["zfc_w"], params["zfc_b"] = _init_linear(keys[0], z_dim, image_size ** 2)
    chans = [1, nef, nef * 2, nef * 4, nef * 8]
    for i in range(4):
        params[f"conv{i}_w"], params[f"conv{i}_b"] = _init_conv(
            keys[1 + i], chans[i + 1], chans[i], 5)
    flat_in = (image_size // 2 ** 4) ** 2 * nef * 8
    params["flat_w"], params["flat_b"] = _init_linear(keys[5], flat_in, 512)
    params["score_w"], params["score_b"] = _init_linear(keys[6], 512, z_dim)
    return params


if __name__ == "__main__":
    # Small synthetic config: nef=4, z_dim=8, image_size=16, batch=2
    NEF, Z_DIM, IMAGE_SIZE, BATCH = 4, 8, 16, 2

    key = jax.random.PRNGKey(0)
    k_params, k_z = jax.random.split(key)
    params = init_score_params(k_params, nef=NEF, z_dim=Z_DIM,
                               image_size=IMAGE_SIZE)
    z = jax.random.normal(k_z, (BATCH, Z_DIM), jnp.float32)

    # One-time weight folding -> fully fused single-kernel forward.
    prepared = prepare_fused_score(params, image_size=IMAGE_SIZE)
    assert prepared is not None, "fused path must fit VMEM at this config"
    fused_layers, out_dim = prepared

    fwd_fused = jax.jit(functools.partial(score_forward_fused, out_dim=out_dim))
    out = fwd_fused(fused_layers, z)
    jax.block_until_ready(out)

    assert out.shape == (BATCH, Z_DIM), out.shape
    assert jnp.all(jnp.isfinite(out))

    # Cross-check against the general tiled multi-kernel path.
    fwd_tiled = jax.jit(functools.partial(score_forward_tiled,
                                          image_size=IMAGE_SIZE))
    out_tiled = fwd_tiled(params, z)
    jax.block_until_ready(out_tiled)
    assert out_tiled.shape == (BATCH, Z_DIM), out_tiled.shape
    assert jnp.allclose(out, out_tiled, rtol=2e-3, atol=2e-3), (
        float(jnp.max(jnp.abs(out - out_tiled))))

    print("KERNEL_OK")
</pallas_src>

<mosaic_0001>
module attributes {stable_mosaic.version = 11 : i64} {
  func.func @_fused_mlp_kernel(%arg0: memref<8x128xf32, #tpu.memory_space<vmem>>, %arg1: memref<128x256xf32, #tpu.memory_space<vmem>>, %arg2: memref<1x256xf32, #tpu.memory_space<vmem>>, %arg3: memref<256x256xf32, #tpu.memory_space<vmem>>, %arg4: memref<1x256xf32, #tpu.memory_space<vmem>>, %arg5: memref<256x128xf32, #tpu.memory_space<vmem>>, %arg6: memref<1x128xf32, #tpu.memory_space<vmem>>, %arg7: memref<128x128xf32, #tpu.memory_space<vmem>>, %arg8: memref<1x128xf32, #tpu.memory_space<vmem>>, %arg9: memref<128x128xf32, #tpu.memory_space<vmem>>, %arg10: memref<1x128xf32, #tpu.memory_space<vmem>>, %arg11: memref<128x512xf32, #tpu.memory_space<vmem>>, %arg12: memref<1x512xf32, #tpu.memory_space<vmem>>, %arg13: memref<512x128xf32, #tpu.memory_space<vmem>>, %arg14: memref<1x128xf32, #tpu.memory_space<vmem>>, %arg15: memref<8x128xf32, #tpu.memory_space<vmem>>) attributes {dimension_semantics = [], scalar_prefetch = 0 : i64, scratch_operands = 0 : i64, tpu.core_type = #tpu.core_type<tc>} {
    %c0 = arith.constant 0 : index
    %c0_0 = arith.constant 0 : index
    %0 = vector.load %arg0[%c0, %c0_0] : memref<8x128xf32, #tpu.memory_space<vmem>>, vector<8x128xf32>
    %c0_1 = arith.constant 0 : index
    %c0_2 = arith.constant 0 : index
    %1 = vector.load %arg1[%c0_1, %c0_2] : memref<128x256xf32, #tpu.memory_space<vmem>>, vector<128x256xf32>
    %c0_3 = arith.constant 0 : index
    %c0_4 = arith.constant 0 : index
    %2 = vector.load %arg2[%c0_3, %c0_4] : memref<1x256xf32, #tpu.memory_space<vmem>>, vector<1x256xf32>
    %cst = arith.constant dense<0.000000e+00> : vector<8x256xf32>
    %3 = tpu.matmul %0, %1, %cst {dimension_numbers = #tpu.dot_dimension_numbers<[1], [0], [0], [1], [0, 0, 1, 1], [], []>} : vector<8x128xf32>, vector<128x256xf32>, vector<8x256xf32> -> vector<8x256xf32>
    %4 = vector.broadcast %2 : vector<1x256xf32> to vector<8x256xf32>
    %5 = arith.addf %3, %4 : vector<8x256xf32>
    %cst_5 = arith.constant 2.000000e+01 : f32
    %6 = vector.broadcast %cst_5 : f32 to vector<8x256xf32>
    %7 = arith.cmpf ogt, %5, %6 : vector<8x256xf32>
    %cst_6 = arith.constant 2.000000e+01 : f32
    %8 = vector.broadcast %cst_6 : f32 to vector<8x256xf32>
    %9 = arith.minimumf %5, %8 : vector<8x256xf32>
    %10 = math.exp %9 : vector<8x256xf32>
    %11 = math.log1p %10 : vector<8x256xf32>
    %12 = arith.select %7, %5, %11 : vector<8x256xi1>, vector<8x256xf32>
    %c0_7 = arith.constant 0 : index
    %c0_8 = arith.constant 0 : index
    %13 = vector.load %arg3[%c0_7, %c0_8] : memref<256x256xf32, #tpu.memory_space<vmem>>, vector<256x256xf32>
    %c0_9 = arith.constant 0 : index
    %c0_10 = arith.constant 0 : index
    %14 = vector.load %arg4[%c0_9, %c0_10] : memref<1x256xf32, #tpu.memory_space<vmem>>, vector<1x256xf32>
    %cst_11 = arith.constant dense<0.000000e+00> : vector<8x256xf32>
    %15 = tpu.matmul %12, %13, %cst_11 {dimension_numbers = #tpu.dot_dimension_numbers<[1], [0], [0], [1], [0, 0, 1, 1], [], []>} : vector<8x256xf32>, vector<256x256xf32>, vector<8x256xf32> -> vector<8x256xf32>
    %16 = vector.broadcast %14 : vector<1x256xf32> to vector<8x256xf32>
    %17 = arith.addf %15, %16 : vector<8x256xf32>
    %cst_12 = arith.constant 2.000000e+01 : f32
    %18 = vector.broadcast %cst_12 : f32 to vector<8x256xf32>
    %19 = arith.cmpf ogt, %17, %18 : vector<8x256xf32>
    %cst_13 = arith.constant 2.000000e+01 : f32
    %20 = vector.broadcast %cst_13 : f32 to vector<8x256xf32>
    %21 = arith.minimumf %17, %20 : vector<8x256xf32>
    %22 = math.exp %21 : vector<8x256xf32>
    %23 = math.log1p %22 : vector<8x256xf32>
    %24 = arith.select %19, %17, %23 : vector<8x256xi1>, vector<8x256xf32>
    %c0_14 = arith.constant 0 : index
    %c0_15 = arith.constant 0 : index
    %25 = vector.load %arg5[%c0_14, %c0_15] : memref<256x128xf32, #tpu.memory_space<vmem>>, vector<256x128xf32>
    %c0_16 = arith.constant 0 : index
    %c0_17 = arith.constant 0 : index
    %26 = vector.load %arg6[%c0_16, %c0_17] : memref<1x128xf32, #tpu.memory_space<vmem>>, vector<1x128xf32>
    %cst_18 = arith.constant dense<0.000000e+00> : vector<8x128xf32>
    %27 = tpu.matmul %24, %25, %cst_18 {dimension_numbers = #tpu.dot_dimension_numbers<[1], [0], [0], [1], [0, 0, 1, 1], [], []>} : vector<8x256xf32>, vector<256x128xf32>, vector<8x128xf32> -> vector<8x128xf32>
    %28 = vector.broadcast %26 : vector<1x128xf32> to vector<8x128xf32>
    %29 = arith.addf %27, %28 : vector<8x128xf32>
    %cst_19 = arith.constant 2.000000e+01 : f32
    %30 = vector.broadcast %cst_19 : f32 to vector<8x128xf32>
    %31 = arith.cmpf ogt, %29, %30 : vector<8x128xf32>
    %cst_20 = arith.constant 2.000000e+01 : f32
    %32 = vector.broadcast %cst_20 : f32 to vector<8x128xf32>
    %33 = arith.minimumf %29, %32 : vector<8x128xf32>
    %34 = math.exp %33 : vector<8x128xf32>
    %35 = math.log1p %34 : vector<8x128xf32>
    %36 = arith.select %31, %29, %35 : vector<8x128xi1>, vector<8x128xf32>
    %c0_21 = arith.constant 0 : index
    %c0_22 = arith.constant 0 : index
    %37 = vector.load %arg7[%c0_21, %c0_22] : memref<128x128xf32, #tpu.memory_space<vmem>>, vector<128x128xf32>
    %c0_23 = arith.constant 0 : index
    %c0_24 = arith.constant 0 : index
    %38 = vector.load %arg8[%c0_23, %c0_24] : memref<1x128xf32, #tpu.memory_space<vmem>>, vector<1x128xf32>
    %cst_25 = arith.constant dense<0.000000e+00> : vector<8x128xf32>
    %39 = tpu.matmul %36, %37, %cst_25 {dimension_numbers = #tpu.dot_dimension_numbers<[1], [0], [0], [1], [0, 0, 1, 1], [], []>} : vector<8x128xf32>, vector<128x128xf32>, vector<8x128xf32> -> vector<8x128xf32>
    %40 = vector.broadcast %38 : vector<1x128xf32> to vector<8x128xf32>
    %41 = arith.addf %39, %40 : vector<8x128xf32>
    %cst_26 = arith.constant 2.000000e+01 : f32
    %42 = vector.broadcast %cst_26 : f32 to vector<8x128xf32>
    %43 = arith.cmpf ogt, %41, %42 : vector<8x128xf32>
    %cst_27 = arith.constant 2.000000e+01 : f32
    %44 = vector.broadcast %cst_27 : f32 to vector<8x128xf32>
    %45 = arith.minimumf %41, %44 : vector<8x128xf32>
    %46 = math.exp %45 : vector<8x128xf32>
    %47 = math.log1p %46 : vector<8x128xf32>
    %48 = arith.select %43, %41, %47 : vector<8x128xi1>, vector<8x128xf32>
    %c0_28 = arith.constant 0 : index
    %c0_29 = arith.constant 0 : index
    %49 = vector.load %arg9[%c0_28, %c0_29] : memref<128x128xf32, #tpu.memory_space<vmem>>, vector<128x128xf32>
    %c0_30 = arith.constant 0 : index
    %c0_31 = arith.constant 0 : index
    %50 = vector.load %arg10[%c0_30, %c0_31] : memref<1x128xf32, #tpu.memory_space<vmem>>, vector<1x128xf32>
    %cst_32 = arith.constant dense<0.000000e+00> : vector<8x128xf32>
    %51 = tpu.matmul %48, %49, %cst_32 {dimension_numbers = #tpu.dot_dimension_numbers<[1], [0], [0], [1], [0, 0, 1, 1], [], []>} : vector<8x128xf32>, vector<128x128xf32>, vector<8x128xf32> -> vector<8x128xf32>
    %52 = vector.broadcast %50 : vector<1x128xf32> to vector<8x128xf32>
    %53 = arith.addf %51, %52 : vector<8x128xf32>
    %cst_33 = arith.constant 2.000000e+01 : f32
    %54 = vector.broadcast %cst_33 : f32 to vector<8x128xf32>
    %55 = arith.cmpf ogt, %53, %54 : vector<8x128xf32>
    %cst_34 = arith.constant 2.000000e+01 : f32
    %56 = vector.broadcast %cst_34 : f32 to vector<8x128xf32>
    %57 = arith.minimumf %53, %56 : vector<8x128xf32>
    %58 = math.exp %57 : vector<8x128xf32>
    %59 = math.log1p %58 : vector<8x128xf32>
    %60 = arith.select %55, %53, %59 : vector<8x128xi1>, vector<8x128xf32>
    %c0_35 = arith.constant 0 : index
    %c0_36 = arith.constant 0 : index
    %61 = vector.load %arg11[%c0_35, %c0_36] : memref<128x512xf32, #tpu.memory_space<vmem>>, vector<128x512xf32>
    %c0_37 = arith.constant 0 : index
    %c0_38 = arith.constant 0 : index
    %62 = vector.load %arg12[%c0_37, %c0_38] : memref<1x512xf32, #tpu.memory_space<vmem>>, vector<1x512xf32>
    %cst_39 = arith.constant dense<0.000000e+00> : vector<8x512xf32>
    %63 = tpu.matmul %60, %61, %cst_39 {dimension_numbers = #tpu.dot_dimension_numbers<[1], [0], [0], [1], [0, 0, 1, 1], [], []>} : vector<8x128xf32>, vector<128x512xf32>, vector<8x512xf32> -> vector<8x512xf32>
    %64 = vector.broadcast %62 : vector<1x512xf32> to vector<8x512xf32>
    %65 = arith.addf %63, %64 : vector<8x512xf32>
    %cst_40 = arith.constant 2.000000e+01 : f32
    %66 = vector.broadcast %cst_40 : f32 to vector<8x512xf32>
    %67 = arith.cmpf ogt, %65, %66 : vector<8x512xf32>
    %cst_41 = arith.constant 2.000000e+01 : f32
    %68 = vector.broadcast %cst_41 : f32 to vector<8x512xf32>
    %69 = arith.minimumf %65, %68 : vector<8x512xf32>
    %70 = math.exp %69 : vector<8x512xf32>
    %71 = math.log1p %70 : vector<8x512xf32>
    %72 = arith.select %67, %65, %71 : vector<8x512xi1>, vector<8x512xf32>
    %c0_42 = arith.constant 0 : index
    %c0_43 = arith.constant 0 : index
    %73 = vector.load %arg13[%c0_42, %c0_43] : memref<512x128xf32, #tpu.memory_space<vmem>>, vector<512x128xf32>
    %c0_44 = arith.constant 0 : index
    %c0_45 = arith.constant 0 : index
    %74 = vector.load %arg14[%c0_44, %c0_45] : memref<1x128xf32, #tpu.memory_space<vmem>>, vector<1x128xf32>
    %cst_46 = arith.constant dense<0.000000e+00> : vector<8x128xf32>
    %75 = tpu.matmul %72, %73, %cst_46 {dimension_numbers = #tpu.dot_dimension_numbers<[1], [0], [0], [1], [0, 0, 1, 1], [], []>} : vector<8x512xf32>, vector<512x128xf32>, vector<8x128xf32> -> vector<8x128xf32>
    %76 = vector.broadcast %74 : vector<1x128xf32> to vector<8x128xf32>
    %77 = arith.addf %75, %76 : vector<8x128xf32>
    %c0_47 = arith.constant 0 : index
    %c0_48 = arith.constant 0 : index
    %78 = vector.load %arg15[%c0_47, %c0_48] : memref<8x128xf32, #tpu.memory_space<vmem>>, vector<8x128xf32>
    tpu.vector_store %arg15[%c0_47, %c0_48], %77 {strides = array<i32>} : memref<8x128xf32, #tpu.memory_space<vmem>>, vector<8x128xf32>,
    return
  }
}

</mosaic_0001>

<bundles_post_ra>
// kernel: score_forward_fused.1
= control target key start
LH: loop header
LB: loop body
LE: loop exit
PB: predicated region body
PF: predicated region fallthrough
CT: control target
= control target key end

     0   :  { %s1404_s0 = inlined_call_operand.vmem [shape: f32[8,128], index: 0, kind: input, shape index: {}]   ;;  %s1405_s1 = inlined_call_operand.hbm [shape: f32[128,256], index: 1, kind: input, shape index: {}]   ;;  %s1406_s2 = inlined_call_operand.vmem [shape: f32[1,256], index: 2, kind: input, shape index: {}]   ;;  %s1407_s3 = inlined_call_operand.hbm [shape: f32[256,256], index: 3, kind: input, shape index: {}]   ;;  %s1408_s4 = inlined_call_operand.vmem [shape: f32[1,256], index: 4, kind: input, shape index: {}]   ;;  %s1409_s5 = inlined_call_operand.hbm [shape: f32[256,128], index: 5, kind: input, shape index: {}]   ;;  %s1410_s6 = inlined_call_operand.vmem [shape: f32[1,128], index: 6, kind: input, shape index: {}]   ;;  %s1411_s7 = inlined_call_operand.hbm [shape: f32[128,128], index: 7, kind: input, shape index: {}]   ;;  %s1412_s8 = inlined_call_operand.vmem [shape: f32[1,128], index: 8, kind: input, shape index: {}]   ;;  %s1413_s9 = inlined_call_operand.hbm [shape: f32[128,128], index: 9, kind: input, shape index: {}]   ;;  %s1414_s10 = inlined_call_operand.vmem [shape: f32[1,128], index: 10, kind: input, shape index: {}]   ;;  %s1415_s11 = inlined_call_operand.hbm [shape: f32[128,512], index: 11, kind: input, shape index: {}]   ;;  %s1416_s12 = inlined_call_operand.vmem [shape: f32[1,512], index: 12, kind: input, shape index: {}]   ;;  %s1417_s13 = inlined_call_operand.hbm [shape: f32[512,128], index: 13, kind: input, shape index: {}]   ;;  %s1418_s14 = inlined_call_operand.vmem [shape: f32[1,128], index: 14, kind: input, shape index: {}]   ;;  %s1419_s15 = inlined_call_operand.vmem [shape: f32[8,128], index: 15, kind: output, shape index: {}]  }
   0x1   :  { %1422 = sst [smem:[#allocation17_spill]] %s1419_s15 }
   0x2   :  { %20 = vsyncpa [#allocation3], 0 }
   0x3   :  { %21 = vsyncpa [#allocation5], 0 }
   0x4   :  { %22 = vsyncpa [#allocation8], 0 }
   0x5   :  { %23 = vsyncpa [#allocation11], 0  ;;  %s45_s20 = sshll.u32 %s1407_s3, 4  ;;  %s1246_s21 = smov [#allocation4]   ;;  %s46_s20 = int_to_ptr.hbm [resolvable:$true] %s45_s20 }
   0x6   :  { %s47_s22 = sshll.u32 %s1246_s21, 4  ;;  %s1247_s23 = smov 256   ;;  %s48_s22 = int_to_ptr.vmem [resolvable:$true] %s47_s22 }
   0x7   :  { %s1248_s24 = smov 16   ;;  %s75_s27 = sshll.u32 %s1411_s7, 4  ;;  %s76_s27 = int_to_ptr.hbm [resolvable:$true] %s75_s27 }
   0x8   :  { %53 = dma.hbm_to_vmem [thread:$0]  %s46_s20, 8192, %s48_s22, [#allocation5], %s1247_s23, %s1247_s23, %s1248_s24  }
   0x9   :  { %s1249_s28 = smov [#allocation7]   ;;  %s105_s17 = sshll.u32 %s1415_s11, 4  ;;  %s106_s17 = int_to_ptr.hbm [resolvable:$true] %s105_s17 }
   0xa   :  { %s77_s29 = sshll.u32 %s1249_s28, 4  ;;  %s1420_s3 = smov 128   ;;  %s78_s29 = int_to_ptr.vmem [resolvable:$true] %s77_s29 }
   0xb   :  { %s1251_s18 = smov 8   ;;  %s1252_s19 = smov [#allocation10]  }
   0xc   :  { %83 = dma.hbm_to_vmem [thread:$0]  %s76_s27, 2048, %s78_s29, [#allocation8], %s1420_s3, %s1420_s3, %s1251_s18  }
   0xd   :  { %s107_s20 = sshll.u32 %s1252_s19, 4  ;;  %s30_s22 = sshll.u32 %s1405_s1, 4  ;;  %s108_s20 = int_to_ptr.vmem [resolvable:$true] %s107_s20  ;;  %s31_s22 = int_to_ptr.hbm [resolvable:$true] %s30_s22 }
   0xe   :  { %s1253_s25 = smov 512   ;;  %s1254_s26 = smov 32  }
   0xf   :  { %113 = dma.hbm_to_vmem [thread:$0]  %s106_s17, 8192, %s108_s20, [#allocation11], %s1253_s25, %s1253_s25, %s1254_s26  }
  0x10   :  { %s1255_s11 = smov [#allocation2]   ;;  %s60_s15 = sshll.u32 %s1409_s5, 4  ;;  %s61_s15 = int_to_ptr.hbm [resolvable:$true] %s60_s15 }
  0x11   :  { %s32_s28 = sshll.u32 %s1255_s11, 4  ;;  %s90_s19 = sshll.u32 %s1413_s9, 4  ;;  %s33_s28 = int_to_ptr.vmem [resolvable:$true] %s32_s28  ;;  %s91_s19 = int_to_ptr.hbm [resolvable:$true] %s90_s19 }
  0x12   :  { %38 = dma.hbm_to_vmem [thread:$0]  %s31_s22, 4096, %s33_s28, [#allocation3], %s1247_s23, %s1247_s23, %s1248_s24  }
  0x13   :  { %s1256_s3 = smov [#allocation6]   ;;  %s1423_s1 = smov 128  }
  0x14   :  { %s62_s21 = sshll.u32 %s1256_s3, 4  ;;  %s1257_s17 = smov [#allocation9]   ;;  %s63_s21 = int_to_ptr.vmem [resolvable:$true] %s62_s21 }
  0x15   :  { %68 = dma.hbm_to_vmem [thread:$0]  %s61_s15, 4096, %s63_s21, [#allocation5], %s1423_s1, %s1423_s1, %s1251_s18  }
  0x16   :  { %s92_s20 = sshll.u32 %s1257_s17, 4  ;;  %s120_s5 = sshll.u32 %s1417_s13, 4  ;;  %s93_s20 = int_to_ptr.vmem [resolvable:$true] %s92_s20  ;;  %s121_s5 = int_to_ptr.hbm [resolvable:$true] %s120_s5 }
  0x17   :  { %98 = dma.hbm_to_vmem [thread:$0]  %s91_s19, 2048, %s93_s20, [#allocation8], %s1423_s1, %s1423_s1, %s1251_s18  }
  0x18   :  { %s1258_s9 = smov [#allocation12]  }
  0x19   :  { %s122_s23 = sshll.u32 %s1258_s9, 4  ;;  %s123_s23 = int_to_ptr.vmem [resolvable:$true] %s122_s23 }
  0x1a   :  { %128 = dma.hbm_to_vmem [thread:$0]  %s121_s5, 8192, %s123_s23, [#allocation11], %s1423_s1, %s1423_s1, %s1251_s18  }
  0x1b   :  { %1238 = dma.done.wait [#allocation3], 4096  }
  0x1c   :  { %1239 = vsyncadd [#allocation3], 4294963200 }
  0x1d   :  { %1240 = dma.done.wait [#allocation5], 12288  }
  0x1e   :  { %1241 = vsyncadd [#allocation5], 4294955008 }
  0x1f   :  { %1242 = dma.done.wait [#allocation8], 4096  }
  0x20   :  { %1243 = vsyncadd [#allocation8], 4294963200 }
  0x21   :  { %1244 = dma.done.wait [#allocation11], 16384  }
  0x22   :  { %1245 = vsyncadd [#allocation11], 4294950912  ;;  %v190_v0 = vld [vmem:[#allocation2 + $0xf0] sm:$0xff]  ;;  %v191_v1 = vld [vmem:[#allocation2 + $0xf8] sm:$0xff]  ;;  %s1424_s27 = sld [smem:[#allocation17_spill]] }
  0x23   :  { %v188_v2 = vld [vmem:[#allocation2 + $0xe0] sm:$0xff]  ;;  %198 = vmatpush.msra.mxu0 %v190_v0  ;;  %218 = vmatpush.msra.mxu1 %v191_v1  ;;  %v189_v3 = vld [vmem:[#allocation2 + $0xe8] sm:$0xff]  ;;  %v186_v4 = vld [vmem:[#allocation2 + $0xd0] sm:$0xff] }
  0x24   :  { %v187_v5 = vld [vmem:[#allocation2 + $0xd8] sm:$0xff]  ;;  %v184_v6 = vld [vmem:[#allocation2 + $0xc0] sm:$0xff]  ;;  %v185_v7 = vld [vmem:[#allocation2 + $0xc8] sm:$0xff] }
  0x25   :  { %199 = vmatpush.msra.mxu0 %v188_v2  ;;  %219 = vmatpush.msra.mxu1 %v189_v3  ;;  %v182_v8 = vld [vmem:[#allocation2 + $0xb0] sm:$0xff]  ;;  %v183_v9 = vld [vmem:[#allocation2 + $0xb8] sm:$0xff]  ;;  %v180_v10 = vld [vmem:[#allocation2 + $0xa0] sm:$0xff] }
  0x26   :  { %v181_v11 = vld [vmem:[#allocation2 + $0xa8] sm:$0xff]  ;;  %v178_v12 = vld [vmem:[#allocation2 + $0x90] sm:$0xff]  ;;  %v179_v13 = vld [vmem:[#allocation2 + $0x98] sm:$0xff] }
  0x27   :  { %200 = vmatpush.msra.mxu0 %v186_v4  ;;  %220 = vmatpush.msra.mxu1 %v187_v5  ;;  %v176_v14 = vld [vmem:[#allocation2 + $0x80] sm:$0xff]  ;;  %v296_v15 = vld [vmem:[#allocation4 + $0xf0] sm:$0xff]  ;;  %v177_v17 = vld [vmem:[#allocation2 + $0x88] sm:$0xff] }
  0x28   :  { %v328_v16 = vld [vmem:[#allocation4 + $0x1f0] sm:$0xff]  ;;  %336 = vmatpush.msra.mxu2 %v296_v15  ;;  %v294_v18 = vld [vmem:[#allocation4 + $0xe0] sm:$0xff]  ;;  %v175_v21 = vld [vmem:[#allocation2 + $0x78] sm:$0xff] }
  0x29   :  { %201 = vmatpush.msra.mxu0 %v184_v6  ;;  %221 = vmatpush.msra.mxu1 %v185_v7  ;;  %v326_v19 = vld [vmem:[#allocation4 + $0x1e0] sm:$0xff]  ;;  %v174_v20 = vld [vmem:[#allocation2 + $0x70] sm:$0xff]  ;;  %v173_v23 = vld [vmem:[#allocation2 + $0x68] sm:$0xff] }
  0x2a   :  { %356 = vmatpush.msra.mxu3 %v328_v16  ;;  %337 = vmatpush.msra.mxu2 %v294_v18  ;;  %v172_v22 = vld [vmem:[#allocation2 + $0x60] sm:$0xff]  ;;  %v170_v24 = vld [vmem:[#allocation2 + $0x50] sm:$0xff]  ;;  %v171_v25 = vld [vmem:[#allocation2 + $0x58] sm:$0xff] }
  0x2b   :  { %202 = vmatpush.msra.mxu0 %v182_v8  ;;  %222 = vmatpush.msra.mxu1 %v183_v9  ;;  %v168_v26 = vld [vmem:[#allocation2 + $0x40] sm:$0xff]  ;;  %v169_v27 = vld [vmem:[#allocation2 + $0x48] sm:$0xff]  ;;  %v166_v28 = vld [vmem:[#allocation2 + $0x30] sm:$0xff] }
  0x2c   :  { %357 = vmatpush.msra.mxu3 %v326_v19  ;;  %v167_v29 = vld [vmem:[#allocation2 + $0x38] sm:$0xff]  ;;  %v164_v30 = vld [vmem:[#allocation2 + $0x20] sm:$0xff]  ;;  %v165_v31 = vld [vmem:[#allocation2 + $0x28] sm:$0xff] }
  0x2d   :  { %203 = vmatpush.msra.mxu0 %v180_v10  ;;  %223 = vmatpush.msra.mxu1 %v181_v11  ;;  %v162_v32 = vld [vmem:[#allocation2 + $0x10] sm:$0xff]  ;;  %v163_v33 = vld [vmem:[#allocation2 + $0x18] sm:$0xff]  ;;  %v160_v34 = vld [vmem:[#allocation2] sm:$0xff] }
  0x2e   :  { %v161_v35 = vld [vmem:[#allocation2 + $0x8] sm:$0xff]  ;;  %v159_v36 = vld [vmem:[%s1404_s0] sm:$0xff]  ;;  %v297_v37 = vld [vmem:[#allocation4 + $0xf8] sm:$0xff] }
  0x2f   :  { %204 = vmatpush.msra.mxu0 %v178_v12  ;;  %224 = vmatpush.msra.mxu1 %v179_v13  ;;  %v329_v38 = vld [vmem:[#allocation4 + $0x1f8] sm:$0xff]  ;;  %v295_v39 = vld [vmem:[#allocation4 + $0xe8] sm:$0xff]  ;;  %v292_v41 = vld [vmem:[#allocation4 + $0xd0] sm:$0xff] }
  0x30   :  { %v327_v40 = vld [vmem:[#allocation4 + $0x1e8] sm:$0xff]  ;;  %v324_v42 = vld [vmem:[#allocation4 + $0x1d0] sm:$0xff]  ;;  %v293_v43 = vld [vmem:[#allocation4 + $0xd8] sm:$0xff]  ;;  %338 = vmatpush.msra.mxu2 %v292_v41 }
  0x31   :  { %205 = vmatpush.msra.mxu0 %v176_v14  ;;  %225 = vmatpush.msra.mxu1 %v177_v17  ;;  %v325_v44 = vld [vmem:[#allocation4 + $0x1d8] sm:$0xff]  ;;  %v290_v45 = vld [vmem:[#allocation4 + $0xc0] sm:$0xff]  ;;  %v291_v47 = vld [vmem:[#allocation4 + $0xc8] sm:$0xff] }
  0x32   :  { %358 = vmatpush.msra.mxu3 %v324_v42  ;;  %v322_v46 = vld [vmem:[#allocation4 + $0x1c0] sm:$0xff]  ;;  %339 = vmatpush.msra.mxu2 %v290_v45  ;;  %v323_v48 = vld [vmem:[#allocation4 + $0x1c8] sm:$0xff]  ;;  %v288_v49 = vld [vmem:[#allocation4 + $0xb0] sm:$0xff] }
  0x33   :  { %206 = vmatpush.msra.mxu0 %v174_v20  ;;  %226 = vmatpush.msra.mxu1 %v175_v21  ;;  %v320_v50 = vld [vmem:[#allocation4 + $0x1b0] sm:$0xff]  ;;  %v289_v51 = vld [vmem:[#allocation4 + $0xb8] sm:$0xff]  ;;  %v286_v53 = vld [vmem:[#allocation4 + $0xa0] sm:$0xff] }
  0x34   :  { %359 = vmatpush.msra.mxu3 %v322_v46  ;;  %340 = vmatpush.msra.mxu2 %v288_v49  ;;  %v321_v52 = vld [vmem:[#allocation4 + $0x1b8] sm:$0xff]  ;;  %v318_v54 = vld [vmem:[#allocation4 + $0x1a0] sm:$0xff]  ;;  %v287_v55 = vld [vmem:[#allocation4 + $0xa8] sm:$0xff] }
  0x35   :  { %207 = vmatpush.msra.mxu0 %v172_v22  ;;  %227 = vmatpush.msra.mxu1 %v173_v23  ;;  %v319_v56 = vld [vmem:[#allocation4 + $0x1a8] sm:$0xff]  ;;  %v284_v57 = vld [vmem:[#allocation4 + $0x90] sm:$0xff]  ;;  %v285_v59 = vld [vmem:[#allocation4 + $0x98] sm:$0xff] }
  0x36   :  { %360 = vmatpush.msra.mxu3 %v320_v50  ;;  %341 = vmatpush.msra.mxu2 %v286_v53  ;;  %v316_v58 = vld [vmem:[#allocation4 + $0x190] sm:$0xff]  ;;  %v317_v60 = vld [vmem:[#allocation4 + $0x198] sm:$0xff]  ;;  %v282_v61 = vld [vmem:[#allocation4 + $0x80] sm:$0xff] }
  0x37   :  { %208 = vmatpush.msra.mxu0 %v170_v24  ;;  %228 = vmatpush.msra.mxu1 %v171_v25  ;;  %v314_v62 = vld [vmem:[#allocation4 + $0x180] sm:$0xff]  ;;  %v283_v63 = vld [vmem:[#allocation4 + $0x88] sm:$0xff]  ;;  %v280_v1 = vld [vmem:[#allocation4 + $0x70] sm:$0xff] }
  0x38   :  { %361 = vmatpush.msra.mxu3 %v318_v54  ;;  %342 = vmatpush.msra.mxu2 %v284_v57  ;;  %v315_v0 = vld [vmem:[#allocation4 + $0x188] sm:$0xff]  ;;  %v312_v2 = vld [vmem:[#allocation4 + $0x170] sm:$0xff]  ;;  %v281_v3 = vld [vmem:[#allocation4 + $0x78] sm:$0xff] }
  0x39   :  { %209 = vmatpush.msra.mxu0 %v168_v26  ;;  %229 = vmatpush.msra.mxu1 %v169_v27  ;;  %v313_v4 = vld [vmem:[#allocation4 + $0x178] sm:$0xff]  ;;  %v278_v5 = vld [vmem:[#allocation4 + $0x60] sm:$0xff]  ;;  %v279_v7 = vld [vmem:[#allocation4 + $0x68] sm:$0xff] }
  0x3a   :  { %362 = vmatpush.msra.mxu3 %v316_v58  ;;  %343 = vmatpush.msra.mxu2 %v282_v61  ;;  %v310_v6 = vld [vmem:[#allocation4 + $0x160] sm:$0xff]  ;;  %v311_v8 = vld [vmem:[#allocation4 + $0x168] sm:$0xff]  ;;  %v276_v9 = vld [vmem:[#allocation4 + $0x50] sm:$0xff] }
  0x3b   :  { %210 = vmatpush.msra.mxu0 %v166_v28  ;;  %230 = vmatpush.msra.mxu1 %v167_v29  ;;  %v308_v10 = vld [vmem:[#allocation4 + $0x150] sm:$0xff]  ;;  %v277_v11 = vld [vmem:[#allocation4 + $0x58] sm:$0xff]  ;;  %v274_v13 = vld [vmem:[#allocation4 + $0x40] sm:$0xff] }
  0x3c   :  { %363 = vmatpush.msra.mxu3 %v314_v62  ;;  %344 = vmatpush.msra.mxu2 %v280_v1  ;;  %v309_v12 = vld [vmem:[#allocation4 + $0x158] sm:$0xff]  ;;  %v306_v14 = vld [vmem:[#allocation4 + $0x140] sm:$0xff]  ;;  %v275_v15 = vld [vmem:[#allocation4 + $0x48] sm:$0xff] }
  0x3d   :  { %211 = vmatpush.msra.mxu0 %v164_v30  ;;  %231 = vmatpush.msra.mxu1 %v165_v31  ;;  %v307_v16 = vld [vmem:[#allocation4 + $0x148] sm:$0xff]  ;;  %v272_v17 = vld [vmem:[#allocation4 + $0x30] sm:$0xff]  ;;  %v273_v19 = vld [vmem:[#allocation4 + $0x38] sm:$0xff] }
  0x3e   :  { %364 = vmatpush.msra.mxu3 %v312_v2  ;;  %345 = vmatpush.msra.mxu2 %v278_v5  ;;  %v304_v18 = vld [vmem:[#allocation4 + $0x130] sm:$0xff]  ;;  %v305_v20 = vld [vmem:[#allocation4 + $0x138] sm:$0xff]  ;;  %v270_v21 = vld [vmem:[#allocation4 + $0x20] sm:$0xff] }
  0x3f   :  { %212 = vmatpush.msra.mxu0 %v162_v32  ;;  %232 = vmatpush.msra.mxu1 %v163_v33  ;;  %v302_v22 = vld [vmem:[#allocation4 + $0x120] sm:$0xff]  ;;  %v271_v23 = vld [vmem:[#allocation4 + $0x28] sm:$0xff]  ;;  %v268_v25 = vld [vmem:[#allocation4 + $0x10] sm:$0xff] }
  0x40   :  { %365 = vmatpush.msra.mxu3 %v310_v6  ;;  %346 = vmatpush.msra.mxu2 %v276_v9  ;;  %v303_v24 = vld [vmem:[#allocation4 + $0x128] sm:$0xff]  ;;  %v300_v26 = vld [vmem:[#allocation4 + $0x110] sm:$0xff]  ;;  %v269_v27 = vld [vmem:[#allocation4 + $0x18] sm:$0xff] }
  0x41   :  { %213 = vmatpush.msra.mxu0 %v160_v34  ;;  %233 = vmatpush.msra.mxu1 %v161_v35  ;;  %v301_v28 = vld [vmem:[#allocation4 + $0x118] sm:$0xff]  ;;  %v266_v29 = vld [vmem:[#allocation4] sm:$0xff]  ;;  %v267_v31 = vld [vmem:[#allocation4 + $0x8] sm:$0xff] }
  0x42   :  { %214 = vmatmul.f32.vlgmr.msra.gmra.mxu0 %v159_v36  ;;  %234 = vmatmul.f32.vlgmr.msra.gmra.mxu1 %v159_v36  ;;  %v298_v30 = vld [vmem:[#allocation4 + $0x100] sm:$0xff]  ;;  %v299_v32 = vld [vmem:[#allocation4 + $0x108] sm:$0xff]  ;;  %v475_v34 = vld [vmem:[#allocation6 + $0xf8] sm:$0xff] }
  0x43   :  { %376 = vmatpush.msrb.mxu0 %v297_v37  ;;  %396 = vmatpush.msrb.mxu1 %v329_v38  ;;  %v192_v33 = vld [vmem:[%s1406_s2] sm:$0x3]  ;;  %v474_v1 = vld [vmem:[#allocation6 + $0xf0] sm:$0xff]  ;;  %v473_v2 = vld [vmem:[#allocation6 + $0xe8] sm:$0xff] }
  0x44   :  { %366 = vmatpush.msra.mxu3 %v308_v10  ;;  %347 = vmatpush.msra.mxu2 %v274_v13  ;;  %v194_v35 = vperm.slane %v192_v33, 0  ;;  %v195_v36 = vperm.slane %v192_v33, 1  ;;  %v458_v5 = vld [vmem:[#allocation6 + $0x70] sm:$0xff]  ;;  %v471_v6 = vld [vmem:[#allocation6 + $0xd8] sm:$0xff]  ;;  %v456_v9 = vld [vmem:[#allocation6 + $0x60] sm:$0xff] }
  0x45   :  { %377 = vmatpush.msrb.mxu0 %v295_v39  ;;  %397 = vmatpush.msrb.mxu1 %v327_v40  ;;  %v469_v10 = vld [vmem:[#allocation6 + $0xc8] sm:$0xff]  ;;  %v454_v13 = vld [vmem:[#allocation6 + $0x50] sm:$0xff] }
  0x46   :  { %367 = vmatpush.msra.mxu3 %v306_v14  ;;  %348 = vmatpush.msra.mxu2 %v272_v17  ;;  %v467_v14 = vld [vmem:[#allocation6 + $0xb8] sm:$0xff]  ;;  %v452_v17 = vld [vmem:[#allocation6 + $0x40] sm:$0xff] }
  0x47   :  { %378 = vmatpush.msrb.mxu0 %v293_v43  ;;  %398 = vmatpush.msrb.mxu1 %v325_v44 }
  0x48   :  { %368 = vmatpush.msra.mxu3 %v304_v18  ;;  %349 = vmatpush.msra.mxu2 %v270_v21  ;;  %v465_v18 = vld [vmem:[#allocation6 + $0xa8] sm:$0xff]  ;;  %v450_v21 = vld [vmem:[#allocation6 + $0x30] sm:$0xff] }
  0x49   :  { %379 = vmatpush.msrb.mxu0 %v291_v47  ;;  %399 = vmatpush.msrb.mxu1 %v323_v48 }
  0x4a   :  { %369 = vmatpush.msra.mxu3 %v302_v22  ;;  %350 = vmatpush.msra.mxu2 %v268_v25  ;;  %v463_v22 = vld [vmem:[#allocation6 + $0x98] sm:$0xff]  ;;  %v448_v25 = vld [vmem:[#allocation6 + $0x20] sm:$0xff] }
  0x4b   :  { %380 = vmatpush.msrb.mxu0 %v289_v51  ;;  %400 = vmatpush.msrb.mxu1 %v321_v52 }
  0x4c   :  { %370 = vmatpush.msra.mxu3 %v300_v26  ;;  %351 = vmatpush.msra.mxu2 %v266_v29  ;;  %v461_v26 = vld [vmem:[#allocation6 + $0x88] sm:$0xff]  ;;  %v460_v29 = vld [vmem:[#allocation6 + $0x80] sm:$0xff] }
  0x4d   :  { %381 = vmatpush.msrb.mxu0 %v287_v55  ;;  %401 = vmatpush.msrb.mxu1 %v319_v56 }
  0x4e   :  { %371 = vmatpush.msra.mxu3 %v298_v30 }
  0x4f   :  { %382 = vmatpush.msrb.mxu0 %v285_v59  ;;  %402 = vmatpush.msrb.mxu1 %v317_v60 }
  0x50   :  { %500 = vmatpush.msrb.mxu3 %v475_v34  ;;  %v444_v34 = vld [vmem:[#allocation6] sm:$0xff] }
  0x51   :  { %383 = vmatpush.msrb.mxu0 %v283_v63  ;;  %403 = vmatpush.msrb.mxu1 %v315_v0 }
  0x52   :  { %501 = vmatpush.msrb.mxu3 %v474_v1 }
  0x53   :  { %384 = vmatpush.msrb.mxu0 %v281_v3  ;;  %404 = vmatpush.msrb.mxu1 %v313_v4  ;;  %v459_v3 = vld [vmem:[#allocation6 + $0x78] sm:$0xff]  ;;  %v472_v4 = vld [vmem:[#allocation6 + $0xe0] sm:$0xff] }
  0x54   :  { %502 = vmatpush.msrb.mxu3 %v473_v2  ;;  %480 = vmatpush.msrb.mxu2 %v459_v3  ;;  %v549_v3 = vld [vmem:[#allocation7 + $0x78] sm:$0xff] }
  0x55   :  { %385 = vmatpush.msrb.mxu0 %v279_v7  ;;  %405 = vmatpush.msrb.mxu1 %v311_v8  ;;  %v457_v7 = vld [vmem:[#allocation6 + $0x68] sm:$0xff]  ;;  %v470_v8 = vld [vmem:[#allocation6 + $0xd0] sm:$0xff] }
  0x56   :  { %503 = vmatpush.msrb.mxu3 %v472_v4  ;;  %481 = vmatpush.msrb.mxu2 %v458_v5  ;;  %v548_v4 = vld [vmem:[#allocation7 + $0x70] sm:$0xff]  ;;  %v547_v5 = vld [vmem:[#allocation7 + $0x68] sm:$0xff] }
  0x57   :  { %386 = vmatpush.msrb.mxu0 %v277_v11  ;;  %406 = vmatpush.msrb.mxu1 %v309_v12  ;;  %v455_v11 = vld [vmem:[#allocation6 + $0x58] sm:$0xff]  ;;  %v468_v12 = vld [vmem:[#allocation6 + $0xc0] sm:$0xff] }
  0x58   :  { %504 = vmatpush.msrb.mxu3 %v471_v6  ;;  %482 = vmatpush.msrb.mxu2 %v457_v7  ;;  %v546_v6 = vld [vmem:[#allocation7 + $0x60] sm:$0xff]  ;;  %v545_v7 = vld [vmem:[#allocation7 + $0x58] sm:$0xff] }
  0x59   :  { %387 = vmatpush.msrb.mxu0 %v275_v15  ;;  %407 = vmatpush.msrb.mxu1 %v307_v16  ;;  %v453_v15 = vld [vmem:[#allocation6 + $0x48] sm:$0xff]  ;;  %v466_v16 = vld [vmem:[#allocation6 + $0xb0] sm:$0xff] }
  0x5a   :  { %505 = vmatpush.msrb.mxu3 %v470_v8  ;;  %483 = vmatpush.msrb.mxu2 %v456_v9  ;;  %v544_v8 = vld [vmem:[#allocation7 + $0x50] sm:$0xff]  ;;  %v543_v9 = vld [vmem:[#allocation7 + $0x48] sm:$0xff] }
  0x5b   :  { %388 = vmatpush.msrb.mxu0 %v273_v19  ;;  %408 = vmatpush.msrb.mxu1 %v305_v20  ;;  %v451_v19 = vld [vmem:[#allocation6 + $0x38] sm:$0xff]  ;;  %v464_v20 = vld [vmem:[#allocation6 + $0xa0] sm:$0xff] }
  0x5c   :  { %506 = vmatpush.msrb.mxu3 %v469_v10  ;;  %484 = vmatpush.msrb.mxu2 %v455_v11  ;;  %v542_v10 = vld [vmem:[#allocation7 + $0x40] sm:$0xff]  ;;  %v541_v11 = vld [vmem:[#allocation7 + $0x38] sm:$0xff] }
  0x5d   :  { %389 = vmatpush.msrb.mxu0 %v271_v23  ;;  %409 = vmatpush.msrb.mxu1 %v303_v24  ;;  %v449_v23 = vld [vmem:[#allocation6 + $0x28] sm:$0xff]  ;;  %v462_v24 = vld [vmem:[#allocation6 + $0x90] sm:$0xff] }
  0x5e   :  { %507 = vmatpush.msrb.mxu3 %v468_v12  ;;  %485 = vmatpush.msrb.mxu2 %v454_v13  ;;  %v540_v12 = vld [vmem:[#allocation7 + $0x30] sm:$0xff]  ;;  %v539_v13 = vld [vmem:[#allocation7 + $0x28] sm:$0xff] }
  0x5f   :  { %390 = vmatpush.msrb.mxu0 %v269_v27  ;;  %410 = vmatpush.msrb.mxu1 %v301_v28  ;;  %v330_v27 = vld [vmem:[%s1408_s4] sm:$0x3]  ;;  %v447_v28 = vld [vmem:[#allocation6 + $0x18] sm:$0xff] }
  0x60   :  { %508 = vmatpush.msrb.mxu3 %v467_v14  ;;  %486 = vmatpush.msrb.mxu2 %v453_v15  ;;  %v333_v30 = vperm.slane %v330_v27, 1  ;;  %v538_v14 = vld [vmem:[#allocation7 + $0x20] sm:$0xff]  ;;  %v537_v15 = vld [vmem:[#allocation7 + $0x18] sm:$0xff] }
  0x61   :  { %391 = vmatpush.msrb.mxu0 %v267_v31  ;;  %411 = vmatpush.msrb.mxu1 %v299_v32  ;;  %v446_v31 = vld [vmem:[#allocation6 + $0x10] sm:$0xff]  ;;  %v445_v32 = vld [vmem:[#allocation6 + $0x8] sm:$0xff] }
  0x62   :  { %509 = vmatpush.msrb.mxu3 %v466_v16  ;;  %487 = vmatpush.msrb.mxu2 %v452_v17  ;;  %v536_v16 = vld [vmem:[#allocation7 + $0x10] sm:$0xff]  ;;  %v535_v17 = vld [vmem:[#allocation7 + $0x8] sm:$0xff] }
  0x63   :  { %554 = vmatpush.msra.mxu0 %v549_v3 }
  0x64   :  { %510 = vmatpush.msrb.mxu3 %v465_v18  ;;  %488 = vmatpush.msrb.mxu2 %v451_v19  ;;  %v534_v18 = vld [vmem:[#allocation7] sm:$0xff] }
  0x65   :  { %555 = vmatpush.msra.mxu0 %v548_v4  ;;  %v1022_v19 = vld [vmem:[%s1410_s6] ss:$0 sm:$0xff] }
  0x66   :  { %511 = vmatpush.msrb.mxu3 %v464_v20  ;;  %489 = vmatpush.msrb.mxu2 %v450_v21  ;;  %v603_v20 = vld [vmem:[#allocation9 + $0x78] sm:$0xff]  ;;  %v602_v21 = vld [vmem:[#allocation9 + $0x70] sm:$0xff] }
  0x67   :  { %556 = vmatpush.msra.mxu0 %v547_v5  ;;  %608 = vmatpush.msra.mxu1 %v603_v20  ;;  %v687_v20 = vld [vmem:[#allocation10 + $0x168] sm:$0xff] }
  0x68   :  { %512 = vmatpush.msrb.mxu3 %v463_v22  ;;  %490 = vmatpush.msrb.mxu2 %v449_v23 }
  0x69   :  { %557 = vmatpush.msra.mxu0 %v546_v6  ;;  %609 = vmatpush.msra.mxu1 %v602_v21  ;;  %v688_v21 = vld [vmem:[#allocation10 + $0x170] sm:$0xff] }
  0x6a   :  { %513 = vmatpush.msrb.mxu3 %v462_v24  ;;  %491 = vmatpush.msrb.mxu2 %v448_v25 }
  0x6b   :  { %558 = vmatpush.msra.mxu0 %v545_v7 }
  0x6c   :  { %514 = vmatpush.msrb.mxu3 %v461_v26  ;;  %492 = vmatpush.msrb.mxu2 %v447_v28 }
  0x6d   :  { %559 = vmatpush.msra.mxu0 %v544_v8 }
  0x6e   :  { %515 = vmatpush.msrb.mxu3 %v460_v29  ;;  %493 = vmatpush.msrb.mxu2 %v446_v31 }
  0x6f   :  { %560 = vmatpush.msra.mxu0 %v543_v9 }
  0x70   :  { %494 = vmatpush.msrb.mxu2 %v445_v32 }
  0x71   :  { %561 = vmatpush.msra.mxu0 %v542_v10 }
  0x72   :  { %495 = vmatpush.msrb.mxu2 %v444_v34 }
  0x73   :  { %562 = vmatpush.msra.mxu0 %v541_v11  ;;  %v694_v11 = vld [vmem:[#allocation10 + $0x1a0] sm:$0xff] }
  0x75   :  { %563 = vmatpush.msra.mxu0 %v540_v12  ;;  %v695_v12 = vld [vmem:[#allocation10 + $0x1a8] sm:$0xff] }
  0x77   :  { %564 = vmatpush.msra.mxu0 %v539_v13  ;;  %v696_v13 = vld [vmem:[#allocation10 + $0x1b0] sm:$0xff] }
  0x79   :  { %565 = vmatpush.msra.mxu0 %v538_v14  ;;  %v697_v14 = vld [vmem:[#allocation10 + $0x1b8] sm:$0xff] }
  0x7b   :  { %566 = vmatpush.msra.mxu0 %v537_v15  ;;  %v690_v15 = vld [vmem:[#allocation10 + $0x180] sm:$0xff] }
  0x7d   :  { %567 = vmatpush.msra.mxu0 %v536_v16  ;;  %v691_v16 = vld [vmem:[#allocation10 + $0x188] sm:$0xff] }
  0x7f   :  { %568 = vmatpush.msra.mxu0 %v535_v17  ;;  %v692_v17 = vld [vmem:[#allocation10 + $0x190] sm:$0xff] }
  0x81   :  { %569 = vmatpush.msra.mxu0 %v534_v18  ;;  %v693_v18 = vld [vmem:[#allocation10 + $0x198] sm:$0xff] }
  0xbf   :  { %v215_v37 = vpop.f32.mrf.mxu0  ;;  %v235_v38 = vpop.f32.mrf.mxu1 }
  0xc0   :  { %v216_v39 = vadd.f32 %v215_v37, %v194_v35  ;;  %v236_v40 = vadd.f32 %v235_v38, %v195_v36  ;;  %v332_v38 = vperm.slane %v330_v27, 0 }
  0xc2   :  { %v240_v41 = vmin.f32 %v216_v39, 20.0  ;;  %v241_v42 = vmin.f32 %v236_v40, 20.0  ;;  %vm238_vm1 = vcmp.gt.f32.partialorder %v216_v39, 20.0  ;;  %vm239_vm3 = vcmp.gt.f32.partialorder %v236_v40, 20.0 }
  0xc4   :  { %v242_v43 = vmul.f32 1.442695, %v240_v41  ;;  %v244_v44 = vmul.f32 1.442695, %v241_v42 }
  0xc6   :  { %1026 = vpow2.f32 %v242_v43 }
  0xc7   :  { %1028 = vpow2.f32 %v244_v44 }
  0xcc   :  { %v1027_v45 = vpop.eup %1026 }
  0xcd   :  { %v1029_v46 = vpop.eup %1028  ;;  %v246_v47 = vadd.f32 1.0, %v1027_v45  ;;  %v249_v48 = vmul.f32 -0.5, %v1027_v45  ;;  %v252_v52 = vand.u32 2147483647, %v1027_v45 }
  0xce   :  { %v255_v49 = vadd.f32 1.0, %v1029_v46  ;;  %v258_v50 = vmul.f32 -0.5, %v1029_v46  ;;  %v261_v54 = vand.u32 2147483647, %v1029_v46 }
  0xcf   :  { %1030 = vlog2.f32 %v246_v47  ;;  %v250_v51 = vadd.f32 1.0, %v249_v48  ;;  %vm253_vm0 = vcmp.lt.f32.partialorder %v252_v52, 0.0004427343 }
  0xd0   :  { %1032 = vlog2.f32 %v255_v49  ;;  %v259_v53 = vadd.f32 1.0, %v258_v50  ;;  %vm262_vm2 = vcmp.lt.f32.partialorder %v261_v54, 0.0004427343 }
  0xd1   :  { %v251_v58 = vmul.f32 %v1027_v45, %v250_v51 }
  0xd2   :  { %v260_v60 = vmul.f32 %v1029_v46, %v259_v53 }
  0xd5   :  { %v1031_v55 = vpop.eup %1030 }
  0xd6   :  { %v1033_v56 = vpop.eup %1032  ;;  %v248_v57 = vmul.f32 0.6931472, %v1031_v55 }
  0xd7   :  { %v257_v59 = vmul.f32 0.6931472, %v1033_v56 }
  0xd8   :  { %v254_v61 = vsel %vm253_vm0, %v251_v58, %v248_v57 }
  0xd9   :  { %v264_v62 = vsel %vm238_vm1, %v216_v39, %v254_v61  ;;  %v263_v63 = vsel %vm262_vm2, %v260_v60, %v257_v59 }
  0xda   :  { %352 = vmatmul.f32.vlgmr.msra.gmra.mxu2 %v264_v62  ;;  %v265_v0 = vsel %vm239_vm3, %v236_v40, %v263_v63  ;;  %392 = vmatmul.f32.vlgmr.msrb.gmra.mxu0 %v264_v62 }
  0xdb   :  { %372 = vmatmul.f32.vlgmr.msra.gmra.mxu3 %v265_v0  ;;  %412 = vmatmul.f32.vlgmr.msrb.gmra.mxu1 %v265_v0 }
 0x157   :  { %v393_v33 = vpop.f32.mrf.mxu0 }
 0x158   :  { %v394_v35 = vadd.f32 %v393_v33, %v333_v30  ;;  %v413_v36 = vpop.f32.mrf.mxu1 }
 0x15a   :  { %v414_v37 = vadd.f32 %v413_v36, %v394_v35 }
 0x15c   :  { %v419_v39 = vmin.f32 %v414_v37, 20.0  ;;  %vm417_vm5 = vcmp.gt.f32.partialorder %v414_v37, 20.0 }
 0x15d   :  { %v353_v40 = vpop.f32.mrf.mxu2 }
 0x15e   :  { %v422_v41 = vmul.f32 1.442695, %v419_v39  ;;  %v354_v42 = vadd.f32 %v353_v40, %v332_v38  ;;  %v373_v43 = vpop.f32.mrf.mxu3  ;;  %v601_v38 = vld [vmem:[#allocation9 + $0x68] sm:$0xff]  ;;  %v600_v39 = vld [vmem:[#allocation9 + $0x60] sm:$0xff]  ;;  %v599_v40 = vld [vmem:[#allocation9 + $0x58] sm:$0xff] }
 0x15f   :  { %610 = vmatpush.msra.mxu1 %v601_v38  ;;  %v673_v38 = vld [vmem:[#allocation10 + $0xf8] sm:$0xff] }
 0x160   :  { %1034 = vpow2.f32 %v422_v41  ;;  %v374_v44 = vadd.f32 %v373_v43, %v354_v42  ;;  %v598_v41 = vld [vmem:[#allocation9 + $0x50] sm:$0xff]  ;;  %v597_v42 = vld [vmem:[#allocation9 + $0x48] sm:$0xff]  ;;  %v596_v43 = vld [vmem:[#allocation9 + $0x40] sm:$0xff] }
 0x161   :  { %611 = vmatpush.msra.mxu1 %v600_v39  ;;  %v666_v39 = vld [vmem:[#allocation10 + $0xc0] sm:$0xff] }
 0x162   :  { %v418_v45 = vmin.f32 %v374_v44, 20.0  ;;  %vm416_vm7 = vcmp.gt.f32.partialorder %v374_v44, 20.0 }
 0x163   :  { %612 = vmatpush.msra.mxu1 %v599_v40  ;;  %v667_v40 = vld [vmem:[#allocation10 + $0xc8] sm:$0xff] }
 0x164   :  { %v420_v46 = vmul.f32 1.442695, %v418_v45  ;;  %v594_v45 = vld [vmem:[#allocation9 + $0x30] sm:$0xff] }
 0x165   :  { %613 = vmatpush.msra.mxu1 %v598_v41  ;;  %v668_v41 = vld [vmem:[#allocation10 + $0xd0] sm:$0xff] }
 0x166   :  { %v1035_v47 = vpop.eup %1034  ;;  %1036 = vpow2.f32 %v420_v46  ;;  %v593_v46 = vld [vmem:[#allocation9 + $0x28] sm:$0xff] }
 0x167   :  { %v433_v48 = vadd.f32 1.0, %v1035_v47  ;;  %v436_v49 = vmul.f32 -0.5, %v1035_v47  ;;  %v439_v52 = vand.u32 2147483647, %v1035_v47  ;;  %614 = vmatpush.msra.mxu1 %v597_v42  ;;  %v669_v42 = vld [vmem:[#allocation10 + $0xd8] sm:$0xff] }
 0x169   :  { %1038 = vlog2.f32 %v433_v48  ;;  %v437_v51 = vadd.f32 1.0, %v436_v49  ;;  %vm440_vm4 = vcmp.lt.f32.partialorder %v439_v52, 0.0004427343  ;;  %615 = vmatpush.msra.mxu1 %v596_v43  ;;  %v591_v48 = vld [vmem:[#allocation9 + $0x18] sm:$0xff]  ;;  %v590_v49 = vld [vmem:[#allocation9 + $0x10] sm:$0xff]  ;;  %v702_v52 = vld [vmem:[#allocation10 + $0x1e0] sm:$0xff] }
 0x16a   :  { %716 = vmatpush.msra.mxu2 %v702_v52  ;;  %v662_v43 = vld [vmem:[#allocation10 + $0xa0] sm:$0xff]  ;;  %v655_v52 = vld [vmem:[#allocation10 + $0x68] sm:$0xff] }
 0x16b   :  { %v438_v57 = vmul.f32 %v1035_v47, %v437_v51  ;;  %v592_v47 = vld [vmem:[#allocation9 + $0x20] sm:$0xff] }
 0x16c   :  { %v1037_v50 = vpop.eup %1036  ;;  %v588_v51 = vld [vmem:[#allocation9] sm:$0xff] }
 0x16d   :  { %v424_v53 = vadd.f32 1.0, %v1037_v50  ;;  %v427_v54 = vmul.f32 -0.5, %v1037_v50  ;;  %v430_v61 = vand.u32 2147483647, %v1037_v50 }
 0x16f   :  { %v1039_v55 = vpop.eup %1038  ;;  %1040 = vlog2.f32 %v424_v53  ;;  %v428_v59 = vadd.f32 1.0, %v427_v54  ;;  %vm431_vm6 = vcmp.lt.f32.partialorder %v430_v61, 0.0004427343  ;;  %v703_v53 = vld [vmem:[#allocation10 + $0x1e8] sm:$0xff]  ;;  %v704_v54 = vld [vmem:[#allocation10 + $0x1f0] sm:$0xff] }
 0x170   :  { %v435_v56 = vmul.f32 0.6931472, %v1039_v55  ;;  %736 = vmatpush.msra.mxu3 %v703_v53  ;;  %v705_v55 = vld [vmem:[#allocation10 + $0x1f8] sm:$0xff]  ;;  %756 = vmatpush.msrb.mxu0 %v704_v54  ;;  %v656_v53 = vld [vmem:[#allocation10 + $0x70] sm:$0xff] }
 0x171   :  { %v429_v0 = vmul.f32 %v1037_v50, %v428_v59  ;;  %v589_v50 = vld [vmem:[#allocation9 + $0x8] sm:$0xff]  ;;  %v700_v59 = vld [vmem:[#allocation10 + $0x1d0] sm:$0xff]  ;;  %v657_v54 = vld [vmem:[#allocation10 + $0x78] sm:$0xff] }
 0x172   :  { %v441_v58 = vsel %vm440_vm4, %v438_v57, %v435_v56  ;;  %v698_v56 = vld [vmem:[#allocation10 + $0x1c0] sm:$0xff]  ;;  %v699_v57 = vld [vmem:[#allocation10 + $0x1c8] sm:$0xff]  ;;  %757 = vmatpush.msrb.mxu0 %v700_v59 }
 0x173   :  { %v443_v60 = vsel %vm417_vm5, %v414_v37, %v441_v58  ;;  %v1023_v58 = vld [vmem:[%s1412_s8] ss:$0 sm:$0xff]  ;;  %717 = vmatpush.msra.mxu2 %v698_v56  ;;  %737 = vmatpush.msra.mxu3 %v699_v57  ;;  %v651_v56 = vld [vmem:[#allocation10 + $0x48] sm:$0xff]  ;;  %v652_v57 = vld [vmem:[#allocation10 + $0x50] sm:$0xff] }
 0x174   :  { %516 = vmatmul.f32.vlgmr.msrb.gmra.mxu3 %v443_v60  ;;  %v701_v60 = vld [vmem:[#allocation10 + $0x1d8] sm:$0xff]  ;;  %758 = vmatpush.msrb.mxu0 %v696_v13  ;;  %v646_v59 = vld [vmem:[#allocation10 + $0x20] sm:$0xff] }
 0x175   :  { %v1041_v62 = vpop.eup %1040  ;;  %718 = vmatpush.msra.mxu2 %v694_v11  ;;  %738 = vmatpush.msra.mxu3 %v695_v12 }
 0x176   :  { %v426_v63 = vmul.f32 0.6931472, %v1041_v62  ;;  %759 = vmatpush.msrb.mxu0 %v692_v17 }
 0x177   :  { %719 = vmatpush.msra.mxu2 %v690_v15  ;;  %739 = vmatpush.msra.mxu3 %v691_v16 }
 0x178   :  { %v432_v1 = vsel %vm431_vm6, %v429_v0, %v426_v63  ;;  %760 = vmatpush.msrb.mxu0 %v688_v21 }
 0x179   :  { %v442_v2 = vsel %vm416_vm7, %v374_v44, %v432_v1  ;;  %v595_v44 = vld [vmem:[#allocation9 + $0x38] sm:$0xff]  ;;  %740 = vmatpush.msra.mxu3 %v687_v20 }
 0x17a   :  { %496 = vmatmul.f32.vlgmr.msrb.gmra.mxu2 %v442_v2  ;;  %616 = vmatpush.msra.mxu1 %v595_v44  ;;  %v663_v44 = vld [vmem:[#allocation10 + $0xa8] sm:$0xff] }
 0x17c   :  { %617 = vmatpush.msra.mxu1 %v594_v45  ;;  %v664_v45 = vld [vmem:[#allocation10 + $0xb0] sm:$0xff] }
 0x17e   :  { %618 = vmatpush.msra.mxu1 %v593_v46  ;;  %v665_v46 = vld [vmem:[#allocation10 + $0xb8] sm:$0xff] }
 0x180   :  { %619 = vmatpush.msra.mxu1 %v592_v47  ;;  %v658_v47 = vld [vmem:[#allocation10 + $0x80] sm:$0xff] }
 0x182   :  { %620 = vmatpush.msra.mxu1 %v591_v48  ;;  %v659_v48 = vld [vmem:[#allocation10 + $0x88] sm:$0xff] }
 0x184   :  { %621 = vmatpush.msra.mxu1 %v590_v49  ;;  %v660_v49 = vld [vmem:[#allocation10 + $0x90] sm:$0xff] }
 0x186   :  { %622 = vmatpush.msra.mxu1 %v589_v50  ;;  %v661_v50 = vld [vmem:[#allocation10 + $0x98] sm:$0xff] }
 0x188   :  { %623 = vmatpush.msra.mxu1 %v588_v51  ;;  %v654_v51 = vld [vmem:[#allocation10 + $0x60] sm:$0xff] }
 0x18a   :  { %776 = vmatpush.msrb.mxu1 %v705_v55  ;;  %v650_v55 = vld [vmem:[#allocation10 + $0x40] sm:$0xff] }
 0x18c   :  { %777 = vmatpush.msrb.mxu1 %v701_v60  ;;  %v647_v60 = vld [vmem:[#allocation10 + $0x28] sm:$0xff] }
 0x18e   :  { %778 = vmatpush.msrb.mxu1 %v697_v14 }
 0x190   :  { %779 = vmatpush.msrb.mxu1 %v693_v18 }
 0x1f7   :  { %v517_v24 = vpop.f32.mrf.mxu3 }
 0x1fd   :  { %v497_v22 = vpop.f32.mrf.mxu2 }
 0x1fe   :  { %v498_v23 = vadd.f32 %v1022_v19, %v497_v22  ;;  %v686_v19 = vld [vmem:[#allocation10 + $0x160] sm:$0xff]  ;;  %v689_v22 = vld [vmem:[#allocation10 + $0x178] sm:$0xff] }
 0x1ff   :  { %720 = vmatpush.msra.mxu2 %v686_v19  ;;  %780 = vmatpush.msrb.mxu1 %v689_v22  ;;  %v897_v22 = vld [vmem:[#allocation12 + $0x168] sm:$0xff] }
 0x200   :  { %v518_v25 = vadd.f32 %v517_v24, %v498_v23  ;;  %v682_v23 = vld [vmem:[#allocation10 + $0x140] sm:$0xff]  ;;  %v683_v24 = vld [vmem:[#allocation10 + $0x148] sm:$0xff] }
 0x201   :  { %721 = vmatpush.msra.mxu2 %v682_v23  ;;  %741 = vmatpush.msra.mxu3 %v683_v24  ;;  %v913_v23 = vld [vmem:[#allocation12 + $0x1e8] sm:$0xff]  ;;  %v867_v24 = vld [vmem:[#allocation12 + $0x78] sm:$0xff] }
 0x202   :  { %v521_v26 = vmin.f32 %v518_v25, 20.0  ;;  %vm520_vm9 = vcmp.gt.f32.partialorder %v518_v25, 20.0 }
 0x204   :  { %v522_v27 = vmul.f32 1.442695, %v521_v26  ;;  %v685_v26 = vld [vmem:[#allocation10 + $0x158] sm:$0xff] }
 0x205   :  { %781 = vmatpush.msrb.mxu1 %v685_v26  ;;  %v896_v26 = vld [vmem:[#allocation12 + $0x160] sm:$0xff] }
 0x206   :  { %1042 = vpow2.f32 %v522_v27  ;;  %v678_v27 = vld [vmem:[#allocation10 + $0x120] sm:$0xff] }
 0x207   :  { %722 = vmatpush.msra.mxu2 %v678_v27  ;;  %v912_v27 = vld [vmem:[#allocation12 + $0x1e0] sm:$0xff] }
 0x20c   :  { %v1043_v28 = vpop.eup %1042 }
 0x20d   :  { %v524_v29 = vadd.f32 1.0, %v1043_v28  ;;  %v527_v30 = vmul.f32 -0.5, %v1043_v28  ;;  %v530_v32 = vand.u32 2147483647, %v1043_v28 }
 0x20f   :  { %1044 = vlog2.f32 %v524_v29  ;;  %v528_v31 = vadd.f32 1.0, %v527_v30  ;;  %vm531_vm8 = vcmp.lt.f32.partialorder %v530_v32, 0.0004427343  ;;  %v680_v29 = vld [vmem:[#allocation10 + $0x130] sm:$0xff]  ;;  %v681_v30 = vld [vmem:[#allocation10 + $0x138] sm:$0xff]  ;;  %v675_v32 = vld [vmem:[#allocation10 + $0x108] sm:$0xff] }
 0x210   :  { %782 = vmatpush.msrb.mxu1 %v681_v30  ;;  %v895_v30 = vld [vmem:[#allocation12 + $0x158] sm:$0xff] }
 0x211   :  { %v529_v35 = vmul.f32 %v1043_v28, %v528_v31  ;;  %v679_v28 = vld [vmem:[#allocation10 + $0x128] sm:$0xff]  ;;  %v674_v31 = vld [vmem:[#allocation10 + $0x100] sm:$0xff] }
 0x212   :  { %742 = vmatpush.msra.mxu3 %v679_v28  ;;  %723 = vmatpush.msra.mxu2 %v674_v31  ;;  %v866_v28 = vld [vmem:[#allocation12 + $0x70] sm:$0xff]  ;;  %v911_v31 = vld [vmem:[#allocation12 + $0x1d8] sm:$0xff] }
 0x214   :  { %743 = vmatpush.msra.mxu3 %v675_v32  ;;  %v865_v32 = vld [vmem:[#allocation12 + $0x68] sm:$0xff] }
 0x215   :  { %v1045_v33 = vpop.eup %1044 }
 0x216   :  { %v526_v34 = vmul.f32 0.6931472, %v1045_v33  ;;  %v676_v33 = vld [vmem:[#allocation10 + $0x110] sm:$0xff] }
 0x218   :  { %v532_v36 = vsel %vm531_vm8, %v529_v35, %v526_v34  ;;  %v677_v34 = vld [vmem:[#allocation10 + $0x118] sm:$0xff]  ;;  %v670_v35 = vld [vmem:[#allocation10 + $0xe0] sm:$0xff] }
 0x219   :  { %v533_v37 = vsel %vm520_vm9, %v518_v25, %v532_v36  ;;  %v684_v25 = vld [vmem:[#allocation10 + $0x150] sm:$0xff]  ;;  %v671_v36 = vld [vmem:[#allocation10 + $0xe8] sm:$0xff]  ;;  %783 = vmatpush.msrb.mxu1 %v677_v34  ;;  %724 = vmatpush.msra.mxu2 %v670_v35 }
 0x21a   :  { %570 = vmatmul.f32.vlgmr.msra.gmra.mxu0 %v533_v37  ;;  %v672_v37 = vld [vmem:[#allocation10 + $0xf0] sm:$0xff]  ;;  %744 = vmatpush.msra.mxu3 %v671_v36  ;;  %v864_v36 = vld [vmem:[#allocation12 + $0x60] sm:$0xff] }
 0x21b   :  { %761 = vmatpush.msrb.mxu0 %v684_v25  ;;  %784 = vmatpush.msrb.mxu1 %v673_v38  ;;  %v883_v25 = vld [vmem:[#allocation12 + $0xf8] sm:$0xff]  ;;  %v894_v34 = vld [vmem:[#allocation12 + $0x150] sm:$0xff]  ;;  %v893_v38 = vld [vmem:[#allocation12 + $0x148] sm:$0xff] }
 0x21c   :  { %725 = vmatpush.msra.mxu2 %v666_v39  ;;  %745 = vmatpush.msra.mxu3 %v667_v40  ;;  %v910_v35 = vld [vmem:[#allocation12 + $0x1d0] sm:$0xff]  ;;  %v909_v39 = vld [vmem:[#allocation12 + $0x1c8] sm:$0xff]  ;;  %v863_v40 = vld [vmem:[#allocation12 + $0x58] sm:$0xff] }
 0x21d   :  { %762 = vmatpush.msrb.mxu0 %v680_v29  ;;  %785 = vmatpush.msrb.mxu1 %v669_v42  ;;  %v882_v29 = vld [vmem:[#allocation12 + $0xf0] sm:$0xff]  ;;  %v892_v42 = vld [vmem:[#allocation12 + $0x140] sm:$0xff] }
 0x21e   :  { %726 = vmatpush.msra.mxu2 %v662_v43  ;;  %746 = vmatpush.msra.mxu3 %v663_v44  ;;  %v908_v43 = vld [vmem:[#allocation12 + $0x1c0] sm:$0xff]  ;;  %v862_v44 = vld [vmem:[#allocation12 + $0x50] sm:$0xff] }
 0x21f   :  { %763 = vmatpush.msrb.mxu0 %v676_v33  ;;  %786 = vmatpush.msrb.mxu1 %v665_v46  ;;  %v881_v33 = vld [vmem:[#allocation12 + $0xe8] sm:$0xff]  ;;  %v891_v46 = vld [vmem:[#allocation12 + $0x138] sm:$0xff] }
 0x220   :  { %727 = vmatpush.msra.mxu2 %v658_v47  ;;  %747 = vmatpush.msra.mxu3 %v659_v48  ;;  %v907_v47 = vld [vmem:[#allocation12 + $0x1b8] sm:$0xff]  ;;  %v861_v48 = vld [vmem:[#allocation12 + $0x48] sm:$0xff] }
 0x221   :  { %764 = vmatpush.msrb.mxu0 %v672_v37  ;;  %787 = vmatpush.msrb.mxu1 %v661_v50  ;;  %v880_v37 = vld [vmem:[#allocation12 + $0xe0] sm:$0xff]  ;;  %v890_v50 = vld [vmem:[#allocation12 + $0x130] sm:$0xff] }
 0x222   :  { %728 = vmatpush.msra.mxu2 %v654_v51  ;;  %748 = vmatpush.msra.mxu3 %v655_v52  ;;  %v906_v51 = vld [vmem:[#allocation12 + $0x1b0] sm:$0xff]  ;;  %v860_v52 = vld [vmem:[#allocation12 + $0x40] sm:$0xff] }
 0x223   :  { %765 = vmatpush.msrb.mxu0 %v668_v41  ;;  %788 = vmatpush.msrb.mxu1 %v657_v54  ;;  %v879_v41 = vld [vmem:[#allocation12 + $0xd8] sm:$0xff]  ;;  %v889_v54 = vld [vmem:[#allocation12 + $0x128] sm:$0xff] }
 0x224   :  { %729 = vmatpush.msra.mxu2 %v650_v55  ;;  %749 = vmatpush.msra.mxu3 %v651_v56  ;;  %v905_v55 = vld [vmem:[#allocation12 + $0x1a8] sm:$0xff]  ;;  %v859_v56 = vld [vmem:[#allocation12 + $0x38] sm:$0xff] }
 0x225   :  { %766 = vmatpush.msrb.mxu0 %v664_v45  ;;  %v878_v45 = vld [vmem:[#allocation12 + $0xd0] sm:$0xff] }
 0x226   :  { %730 = vmatpush.msra.mxu2 %v646_v59  ;;  %750 = vmatpush.msra.mxu3 %v647_v60  ;;  %v904_v59 = vld [vmem:[#allocation12 + $0x1a0] sm:$0xff]  ;;  %v858_v60 = vld [vmem:[#allocation12 + $0x30] sm:$0xff] }
 0x227   :  { %767 = vmatpush.msrb.mxu0 %v660_v49  ;;  %v877_v49 = vld [vmem:[#allocation12 + $0xc8] sm:$0xff] }
 0x229   :  { %768 = vmatpush.msrb.mxu0 %v656_v53  ;;  %v876_v53 = vld [vmem:[#allocation12 + $0xc0] sm:$0xff] }
 0x22b   :  { %769 = vmatpush.msrb.mxu0 %v652_v57  ;;  %v875_v57 = vld [vmem:[#allocation12 + $0xb8] sm:$0xff] }
 0x297   :  { %v571_v61 = vpop.f32.mrf.mxu0 }
 0x298   :  { %v572_v62 = vadd.f32 %v1023_v58, %v571_v61  ;;  %v653_v58 = vld [vmem:[#allocation10 + $0x58] sm:$0xff]  ;;  %v648_v61 = vld [vmem:[#allocation10 + $0x30] sm:$0xff] }
 0x299   :  { %789 = vmatpush.msrb.mxu1 %v653_v58  ;;  %770 = vmatpush.msrb.mxu0 %v648_v61  ;;  %v888_v58 = vld [vmem:[#allocation12 + $0x120] sm:$0xff]  ;;  %v874_v61 = vld [vmem:[#allocation12 + $0xb0] sm:$0xff] }
 0x29a   :  { %v575_v63 = vmin.f32 %v572_v62, 20.0  ;;  %vm574_vm11 = vcmp.gt.f32.partialorder %v572_v62, 20.0 }
 0x29c   :  { %v576_v0 = vmul.f32 1.442695, %v575_v63  ;;  %v642_v63 = vld [vmem:[#allocation10] sm:$0xff] }
 0x29d   :  { %731 = vmatpush.msra.mxu2 %v642_v63  ;;  %v903_v63 = vld [vmem:[#allocation12 + $0x198] sm:$0xff] }
 0x29e   :  { %1046 = vpow2.f32 %v576_v0  ;;  %v643_v0 = vld [vmem:[#allocation10 + $0x8] sm:$0xff] }
 0x29f   :  { %751 = vmatpush.msra.mxu3 %v643_v0  ;;  %920 = vmatpush.msrb.mxu2 %v867_v24  ;;  %v857_v0 = vld [vmem:[#allocation12 + $0x28] sm:$0xff] }
 0x2a1   :  { %940 = vmatpush.msrb.mxu3 %v883_v25  ;;  %921 = vmatpush.msrb.mxu2 %v866_v28 }
 0x2a3   :  { %941 = vmatpush.msrb.mxu3 %v882_v29  ;;  %922 = vmatpush.msrb.mxu2 %v865_v32 }
 0x2a4   :  { %v1047_v1 = vpop.eup %1046 }
 0x2a5   :  { %v578_v2 = vadd.f32 1.0, %v1047_v1  ;;  %v581_v3 = vmul.f32 -0.5, %v1047_v1  ;;  %v584_v5 = vand.u32 2147483647, %v1047_v1  ;;  %942 = vmatpush.msrb.mxu3 %v881_v33  ;;  %923 = vmatpush.msrb.mxu2 %v864_v36 }
 0x2a7   :  { %1048 = vlog2.f32 %v578_v2  ;;  %v582_v4 = vadd.f32 1.0, %v581_v3  ;;  %vm585_vm10 = vcmp.lt.f32.partialorder %v584_v5, 0.0004427343  ;;  %v645_v2 = vld [vmem:[#allocation10 + $0x18] sm:$0xff]  ;;  %v898_v5 = vld [vmem:[#allocation12 + $0x170] sm:$0xff]  ;;  %943 = vmatpush.msrb.mxu3 %v880_v37  ;;  %924 = vmatpush.msrb.mxu2 %v863_v40 }
 0x2a8   :  { %v899_v3 = vld [vmem:[#allocation12 + $0x178] sm:$0xff] }
 0x2a9   :  { %v583_v8 = vmul.f32 %v1047_v1, %v582_v4  ;;  %v644_v1 = vld [vmem:[#allocation10 + $0x10] sm:$0xff]  ;;  %v915_v4 = vld [vmem:[#allocation12 + $0x1f8] sm:$0xff]  ;;  %944 = vmatpush.msrb.mxu3 %v879_v41  ;;  %925 = vmatpush.msrb.mxu2 %v862_v44 }
 0x2aa   :  { %771 = vmatpush.msrb.mxu0 %v644_v1  ;;  %v873_v1 = vld [vmem:[#allocation12 + $0xa8] sm:$0xff] }
 0x2ab   :  { %945 = vmatpush.msrb.mxu3 %v878_v45  ;;  %926 = vmatpush.msrb.mxu2 %v861_v48 }
 0x2ac   :  { %960 = vmatpush.msra.mxu0 %v899_v3  ;;  %v902_v3 = vld [vmem:[#allocation12 + $0x190] sm:$0xff] }
 0x2ad   :  { %v1049_v6 = vpop.eup %1048  ;;  %946 = vmatpush.msrb.mxu3 %v877_v49  ;;  %927 = vmatpush.msrb.mxu2 %v860_v52 }
 0x2ae   :  { %v580_v7 = vmul.f32 0.6931472, %v1049_v6  ;;  %v1024_v6 = vld [vmem:[%s1414_s10] ss:$0 sm:$0xff]  ;;  %961 = vmatpush.msra.mxu0 %v898_v5 }
 0x2af   :  { %947 = vmatpush.msrb.mxu3 %v876_v53  ;;  %928 = vmatpush.msrb.mxu2 %v859_v56  ;;  %v872_v5 = vld [vmem:[#allocation12 + $0xa0] sm:$0xff] }
 0x2b0   :  { %v586_v9 = vsel %vm585_vm10, %v583_v8, %v580_v7  ;;  %v914_v7 = vld [vmem:[#allocation12 + $0x1f0] sm:$0xff]  ;;  %962 = vmatpush.msra.mxu0 %v897_v22 }
 0x2b1   :  { %v587_v10 = vsel %vm574_vm11, %v572_v62, %v586_v9  ;;  %v649_v62 = vld [vmem:[#allocation10 + $0x38] sm:$0xff]  ;;  %948 = vmatpush.msrb.mxu3 %v875_v57  ;;  %929 = vmatpush.msrb.mxu2 %v858_v60 }
 0x2b2   :  { %624 = vmatmul.f32.vlgmr.msra.gmra.mxu1 %v587_v10  ;;  %963 = vmatpush.msra.mxu0 %v896_v26 }
 0x2b3   :  { %790 = vmatpush.msrb.mxu1 %v649_v62  ;;  %v887_v62 = vld [vmem:[#allocation12 + $0x118] sm:$0xff]  ;;  %949 = vmatpush.msrb.mxu3 %v874_v61 }
 0x2b4   :  { %964 = vmatpush.msra.mxu0 %v895_v30  ;;  %930 = vmatpush.msrb.mxu2 %v857_v0 }
 0x2b5   :  { %791 = vmatpush.msrb.mxu1 %v645_v2  ;;  %v886_v2 = vld [vmem:[#allocation12 + $0x110] sm:$0xff]  ;;  %950 = vmatpush.msrb.mxu3 %v873_v1 }
 0x2b6   :  { %965 = vmatpush.msra.mxu0 %v894_v34 }
 0x2b7   :  { %980 = vmatpush.msra.mxu1 %v915_v4  ;;  %v856_v4 = vld [vmem:[#allocation12 + $0x20] sm:$0xff]  ;;  %951 = vmatpush.msrb.mxu3 %v872_v5 }
 0x2b8   :  { %966 = vmatpush.msra.mxu0 %v893_v38  ;;  %931 = vmatpush.msrb.mxu2 %v856_v4 }
 0x2b9   :  { %981 = vmatpush.msra.mxu1 %v914_v7  ;;  %v901_v7 = vld [vmem:[#allocation12 + $0x188] sm:$0xff] }
 0x2ba   :  { %967 = vmatpush.msra.mxu0 %v892_v42 }
 0x2bb   :  { %982 = vmatpush.msra.mxu1 %v913_v23 }
 0x2bc   :  { %968 = vmatpush.msra.mxu0 %v891_v46 }
 0x2bd   :  { %983 = vmatpush.msra.mxu1 %v912_v27 }
 0x2be   :  { %969 = vmatpush.msra.mxu0 %v890_v50 }
 0x2bf   :  { %984 = vmatpush.msra.mxu1 %v911_v31 }
 0x2c0   :  { %970 = vmatpush.msra.mxu0 %v889_v54 }
 0x2c1   :  { %985 = vmatpush.msra.mxu1 %v910_v35 }
 0x2c2   :  { %971 = vmatpush.msra.mxu0 %v888_v58 }
 0x2c3   :  { %986 = vmatpush.msra.mxu1 %v909_v39 }
 0x2c4   :  { %972 = vmatpush.msra.mxu0 %v887_v62 }
 0x2c5   :  { %987 = vmatpush.msra.mxu1 %v908_v43 }
 0x2c6   :  { %973 = vmatpush.msra.mxu0 %v886_v2 }
 0x2c7   :  { %988 = vmatpush.msra.mxu1 %v907_v47 }
 0x2c9   :  { %989 = vmatpush.msra.mxu1 %v906_v51 }
 0x2cb   :  { %990 = vmatpush.msra.mxu1 %v905_v55 }
 0x2cd   :  { %991 = vmatpush.msra.mxu1 %v904_v59 }
 0x2cf   :  { %992 = vmatpush.msra.mxu1 %v903_v63 }
 0x2d1   :  { %993 = vmatpush.msra.mxu1 %v902_v3 }
 0x2d3   :  { %994 = vmatpush.msra.mxu1 %v901_v7 }
 0x32f   :  { %v625_v8 = vpop.f32.mrf.mxu1 }
 0x330   :  { %v626_v9 = vadd.f32 %v1024_v6, %v625_v8  ;;  %v885_v6 = vld [vmem:[#allocation12 + $0x108] sm:$0xff]  ;;  %v855_v8 = vld [vmem:[#allocation12 + $0x18] sm:$0xff] }
 0x331   :  { %974 = vmatpush.msra.mxu0 %v885_v6  ;;  %932 = vmatpush.msrb.mxu2 %v855_v8 }
 0x332   :  { %v629_v10 = vmin.f32 %v626_v9, 20.0  ;;  %vm628_vm13 = vcmp.gt.f32.partialorder %v626_v9, 20.0 }
 0x334   :  { %v630_v11 = vmul.f32 1.442695, %v629_v10  ;;  %v884_v10 = vld [vmem:[#allocation12 + $0x100] sm:$0xff] }
 0x335   :  { %975 = vmatpush.msra.mxu0 %v884_v10 }
 0x336   :  { %1050 = vpow2.f32 %v630_v11  ;;  %v900_v11 = vld [vmem:[#allocation12 + $0x180] sm:$0xff] }
 0x337   :  { %995 = vmatpush.msra.mxu1 %v900_v11 }
 0x33c   :  { %v1051_v12 = vpop.eup %1050 }
 0x33d   :  { %v632_v13 = vadd.f32 1.0, %v1051_v12  ;;  %v635_v14 = vmul.f32 -0.5, %v1051_v12  ;;  %v638_v16 = vand.u32 2147483647, %v1051_v12 }
 0x33f   :  { %1052 = vlog2.f32 %v632_v13  ;;  %v636_v15 = vadd.f32 1.0, %v635_v14  ;;  %vm639_vm12 = vcmp.lt.f32.partialorder %v638_v16, 0.0004427343  ;;  %v854_v13 = vld [vmem:[#allocation12 + $0x10] sm:$0xff] }
 0x340   :  { %v870_v14 = vld [vmem:[#allocation12 + $0x90] sm:$0xff]  ;;  %933 = vmatpush.msrb.mxu2 %v854_v13 }
 0x341   :  { %v637_v19 = vmul.f32 %v1051_v12, %v636_v15  ;;  %v706_v12 = vld [vmem:[%s1416_s12] sm:$0xf]  ;;  %v853_v15 = vld [vmem:[#allocation12 + $0x8] sm:$0xff] }
 0x342   :  { %v710_v16 = vperm.slane %v706_v12, 2  ;;  %934 = vmatpush.msrb.mxu2 %v853_v15  ;;  %v708_v25 = vperm.slane %v706_v12, 0  ;;  %v709_v26 = vperm.slane %v706_v12, 1  ;;  %v1025_v15 = vld [vmem:[%s1418_s14] ss:$0 sm:$0xff] }
 0x345   :  { %v1053_v17 = vpop.eup %1052 }
 0x346   :  { %v634_v18 = vmul.f32 0.6931472, %v1053_v17  ;;  %v711_v17 = vperm.slane %v706_v12, 3 }
 0x348   :  { %v640_v20 = vsel %vm639_vm12, %v637_v19, %v634_v18  ;;  %v869_v18 = vld [vmem:[#allocation12 + $0x88] sm:$0xff]  ;;  %v852_v19 = vld [vmem:[#allocation12] sm:$0xff] }
 0x349   :  { %v641_v21 = vsel %vm628_vm13, %v626_v9, %v640_v20  ;;  %v871_v9 = vld [vmem:[#allocation12 + $0x98] sm:$0xff]  ;;  %v868_v20 = vld [vmem:[#allocation12 + $0x80] sm:$0xff]  ;;  %935 = vmatpush.msrb.mxu2 %v852_v19 }
 0x34a   :  { %732 = vmatmul.f32.vlgmr.msra.gmra.mxu2 %v641_v21  ;;  %752 = vmatmul.f32.vlgmr.msra.gmra.mxu3 %v641_v21 }
 0x34b   :  { %772 = vmatmul.f32.vlgmr.msrb.gmra.mxu0 %v641_v21  ;;  %792 = vmatmul.f32.vlgmr.msrb.gmra.mxu1 %v641_v21 }
 0x34c   :  { %952 = vmatpush.msrb.mxu3 %v871_v9 }
 0x34e   :  { %953 = vmatpush.msrb.mxu3 %v870_v14 }
 0x350   :  { %954 = vmatpush.msrb.mxu3 %v869_v18 }
 0x352   :  { %955 = vmatpush.msrb.mxu3 %v868_v20 }
 0x3c8   :  { %v773_v21 = vpop.f32.mrf.mxu0  ;;  %v793_v22 = vpop.f32.mrf.mxu1 }
 0x3c9   :  { %v774_v23 = vadd.f32 %v773_v21, %v710_v16  ;;  %v794_v24 = vadd.f32 %v793_v22, %v711_v17 }
 0x3cb   :  { %v802_v27 = vmin.f32 %v774_v23, 20.0  ;;  %v803_v28 = vmin.f32 %v794_v24, 20.0  ;;  %vm798_vm14 = vcmp.gt.f32.partialorder %v774_v23, 20.0  ;;  %vm799_vm1 = vcmp.gt.f32.partialorder %v794_v24, 20.0 }
 0x3cd   :  { %v808_v29 = vmul.f32 1.442695, %v802_v27  ;;  %v810_v30 = vmul.f32 1.442695, %v803_v28  ;;  %v733_v31 = vpop.f32.mrf.mxu2  ;;  %v753_v32 = vpop.f32.mrf.mxu3 }
 0x3ce   :  { %v734_v33 = vadd.f32 %v733_v31, %v708_v25  ;;  %v1393_v34 = vadd.f32 %v753_v32, %v709_v26 }
 0x3cf   :  { %1054 = vpow2.f32 %v808_v29 }
 0x3d0   :  { %1056 = vpow2.f32 %v810_v30  ;;  %v800_v35 = vmin.f32 %v734_v33, 20.0  ;;  %v801_v36 = vmin.f32 %v1393_v34, 20.0  ;;  %vm796_vm3 = vcmp.gt.f32.partialorder %v734_v33, 20.0 }
 0x3d1   :  { %vm797_vm5 = vcmp.gt.f32.partialorder %v1393_v34, 20.0 }
 0x3d2   :  { %v804_v37 = vmul.f32 1.442695, %v800_v35  ;;  %v806_v38 = vmul.f32 1.442695, %v801_v36 }
 0x3d4   :  { %1058 = vpow2.f32 %v804_v37 }
 0x3d5   :  { %v1055_v39 = vpop.eup %1054  ;;  %1060 = vpow2.f32 %v806_v38 }
 0x3d6   :  { %v1057_v40 = vpop.eup %1056  ;;  %v830_v41 = vadd.f32 1.0, %v1055_v39  ;;  %v833_v42 = vmul.f32 -0.5, %v1055_v39  ;;  %v836_v49 = vand.u32 2147483647, %v1055_v39 }
 0x3d7   :  { %v839_v43 = vadd.f32 1.0, %v1057_v40  ;;  %v842_v44 = vmul.f32 -0.5, %v1057_v40  ;;  %v845_v53 = vand.u32 2147483647, %v1057_v40 }
 0x3d8   :  { %1062 = vlog2.f32 %v830_v41  ;;  %v834_v47 = vadd.f32 1.0, %v833_v42  ;;  %vm837_vm15 = vcmp.lt.f32.partialorder %v836_v49, 0.0004427343 }
 0x3d9   :  { %1064 = vlog2.f32 %v839_v43  ;;  %v843_v50 = vadd.f32 1.0, %v842_v44  ;;  %vm846_vm0 = vcmp.lt.f32.partialorder %v845_v53, 0.0004427343 }
 0x3da   :  { %v1059_v45 = vpop.eup %1058  ;;  %v835_v58 = vmul.f32 %v1055_v39, %v834_v47 }
 0x3db   :  { %v1061_v46 = vpop.eup %1060  ;;  %v812_v48 = vadd.f32 1.0, %v1059_v45  ;;  %v815_v51 = vmul.f32 -0.5, %v1059_v45  ;;  %v844_v60 = vmul.f32 %v1057_v40, %v843_v50  ;;  %v818_v63 = vand.u32 2147483647, %v1059_v45 }
 0x3dc   :  { %v821_v52 = vadd.f32 1.0, %v1061_v46  ;;  %v824_v54 = vmul.f32 -0.5, %v1061_v46  ;;  %v827_v3 = vand.u32 2147483647, %v1061_v46 }
 0x3dd   :  { %1066 = vlog2.f32 %v812_v48  ;;  %v816_v61 = vadd.f32 1.0, %v815_v51  ;;  %vm819_vm2 = vcmp.lt.f32.partialorder %v818_v63, 0.0004427343 }
 0x3de   :  { %v1063_v55 = vpop.eup %1062  ;;  %1068 = vlog2.f32 %v821_v52  ;;  %v825_v0 = vadd.f32 1.0, %v824_v54  ;;  %vm828_vm4 = vcmp.lt.f32.partialorder %v827_v3, 0.0004427343 }
 0x3df   :  { %v1065_v56 = vpop.eup %1064  ;;  %v832_v57 = vmul.f32 0.6931472, %v1063_v55  ;;  %v817_v8 = vmul.f32 %v1059_v45, %v816_v61 }
 0x3e0   :  { %v841_v59 = vmul.f32 0.6931472, %v1065_v56  ;;  %v826_v10 = vmul.f32 %v1061_v46, %v825_v0 }
 0x3e1   :  { %v838_v62 = vsel %vm837_vm15, %v835_v58, %v832_v57 }
 0x3e2   :  { %v850_v1 = vsel %vm798_vm14, %v774_v23, %v838_v62  ;;  %v847_v2 = vsel %vm846_vm0, %v844_v60, %v841_v59 }
 0x3e3   :  { %v1067_v4 = vpop.eup %1066  ;;  %976 = vmatmul.f32.vlgmr.msra.gmra.mxu0 %v850_v1  ;;  %v851_v5 = vsel %vm799_vm1, %v794_v24, %v847_v2 }
 0x3e4   :  { %v1069_v6 = vpop.eup %1068  ;;  %996 = vmatmul.f32.vlgmr.msra.gmra.mxu1 %v851_v5  ;;  %v814_v7 = vmul.f32 0.6931472, %v1067_v4 }
 0x3e5   :  { %v823_v9 = vmul.f32 0.6931472, %v1069_v6 }
 0x3e6   :  { %v820_v11 = vsel %vm819_vm2, %v817_v8, %v814_v7 }
 0x3e7   :  { %v848_v12 = vsel %vm796_vm3, %v734_v33, %v820_v11  ;;  %v829_v13 = vsel %vm828_vm4, %v826_v10, %v823_v9 }
 0x3e8   :  { %936 = vmatmul.f32.vlgmr.msrb.gmra.mxu2 %v848_v12  ;;  %v849_v14 = vsel %vm797_vm5, %v1393_v34, %v829_v13 }
 0x3e9   :  { %956 = vmatmul.f32.vlgmr.msrb.gmra.mxu3 %v849_v14 }
 0x460   :  { %v977_v20 = vpop.f32.mrf.mxu0 }
 0x461   :  { %v997_v22 = vpop.f32.mrf.mxu1 }
 0x46b   :  { %v937_v16 = vpop.f32.mrf.mxu2 }
 0x46c   :  { %v938_v17 = vadd.f32 %v1025_v15, %v937_v16  ;;  %v957_v18 = vpop.f32.mrf.mxu3 }
 0x46e   :  { %v958_v19 = vadd.f32 %v957_v18, %v938_v17 }
 0x470   :  { %v978_v21 = vadd.f32 %v977_v20, %v958_v19 }
 0x472   :  { %v998_v23 = vadd.f32 %v997_v22, %v978_v21 }
 0x474   :  { %1000 = vst [vmem:[%s1424_s27] sm:$0xff] %v998_v23 }
 0x475   :  { %1005 = vsyncpa [#allocation3], 1 }
 0x476   :  { %1006 = vsyncpa [#allocation5], 1 }
 0x477   :  { %1007 = vsyncpa [#allocation8], 1 }
 0x478   :  { %1008 = vsyncpa [#allocation11], 1 }

</bundles_post_ra>
